<compile_context>
chip_gen: v7x
topology: tpu7x:2x2x1
jax: 0.10.0
libtpu: 0.0.40
codegen_flags: <defaults>
</compile_context>

<pallas_src>
import functools

import numpy as np

import jax
import jax.numpy as jnp
from jax.experimental import pallas as pl
from jax.experimental.pallas import tpu as pltpu

# ---------------- small CLIP-ViT config ----------------
IMG = 16            # image height / width
CHANNELS = 3        # RGB
PATCH = 8           # patch size -> grid 2x2
GRID = IMG // PATCH
N_PATCHES = GRID * GRID
TOKENS = N_PATCHES + 1       # +1 class token = 5
WIDTH = 32                   # transformer width
HEADS = 4
HEAD_DIM = WIDTH // HEADS    # 8
MLP_HIDDEN = 4 * WIDTH       # 128
LAYERS = 2
EMBED_DIM = 16               # output embedding dim (visual.proj)
LN_EPS = 1e-5
CPP = CHANNELS * PATCH * PATCH   # 192 = flattened patch (1.5 * 128 lanes, lane-dense)
ATTN_SCALE = 1.0 / (HEAD_DIM ** 0.5)
NEG_INF = -1e30


# ---------------- in-kernel helpers ----------------
def _ln(x, g, b):
    mean = jnp.mean(x, axis=-1, keepdims=True)
    xc = x - mean
    var = jnp.mean(xc * xc, axis=-1, keepdims=True)
    return xc * jax.lax.rsqrt(var + LN_EPS) * g + b


def _attn_bias(chunk_imgs):
    """Additive mask for the head-flattened [H*bt, H*bt] score matrix.

    Slab token layout: rows 0..chunk_imgs-1 are class tokens (one per image),
    then N_PATCHES rows per image.  Head-flattened row index r = head*bt + token.
    Valid (bias 0) iff same head AND same image; else NEG_INF.  Built host-side
    with numpy (tiny constant), so the kernel needs no iota / integer division.
    """
    bt = chunk_imgs * TOKENS
    tok_img = np.array(
        [t if t < chunk_imgs else (t - chunk_imgs) // N_PATCHES for t in range(bt)],
        dtype=np.int32)
    img = np.tile(tok_img, HEADS)                 # r = head*bt + token
    head = np.repeat(np.arange(HEADS), bt)
    valid = (img[:, None] == img[None, :]) & (head[:, None] == head[None, :])
    return jnp.asarray(np.where(valid, 0.0, NEG_INF).astype(np.float32))


# ---------------- the single fused encoder kernel (one grid step == one chunk) ----
def _make_encoder_kernel(chunk_imgs, compute_dtype):
    bt = chunk_imgs * TOKENS          # tokens in the slab

    def kernel(patches_ref,                      # [1, chunk*N_PATCHES, CPP] (compute dtype)
               bias_ref,                         # [H*bt, H*bt] f32 additive mask
               conv_w_ref,                       # [CPP, WIDTH]
               cls_pos_ref,                      # [1, WIDTH]  = class_embedding + pos[0]
               pos_patch_ref,                    # [chunk*N_PATCHES, WIDTH] = tile(pos[1:])
               ln_pre_g_ref, ln_pre_b_ref,       # [1, WIDTH]
               ln1_g_ref, ln1_b_ref,             # [LAYERS, 1, WIDTH]
               w_qkv_ref,                        # [LAYERS, WIDTH, 3*WIDTH]
               b_qkv_ref,                        # [LAYERS, 1, 3*WIDTH]
               w_out_ref,                        # [LAYERS, WIDTH, WIDTH]
               b_out_ref,                        # [LAYERS, 1, WIDTH]
               ln2_g_ref, ln2_b_ref,             # [LAYERS, 1, WIDTH]
               mlp_w1_ref, mlp_b1_ref,           # [LAYERS, WIDTH, MLP_HIDDEN], [LAYERS,1,MLP_HIDDEN]
               mlp_w2_ref, mlp_b2_ref,           # [LAYERS, MLP_HIDDEN, WIDTH], [LAYERS,1,WIDTH]
               ln_post_g_ref, ln_post_b_ref,     # [1, WIDTH]
               proj_ref,                         # [WIDTH, EMBED_DIM]
               o_ref):                           # [1, chunk_imgs, EMBED_DIM]
        cdt = compute_dtype

        # --- patch embed (single lane-dense matmul) + class tokens + pos embed + ln_pre ---
        pe = jnp.dot(patches_ref[0], conv_w_ref[...],
                     preferred_element_type=jnp.float32) + pos_patch_ref[...]
        cls = jnp.broadcast_to(cls_pos_ref[...], (chunk_imgs, WIDTH))
        x = jnp.concatenate([cls, pe], axis=0)                     # [bt, WIDTH]
        x = _ln(x, ln_pre_g_ref[...], ln_pre_b_ref[...])

        bias = bias_ref[...]                                       # [H*bt, H*bt]

        # --- transformer: static unroll, weights stay VMEM resident across layers ---
        for l in range(LAYERS):
            # ---- attention: 1 QKV matmul, 1 masked score matmul, 1 PV matmul, 1 out-proj ----
            h = _ln(x, ln1_g_ref[l], ln1_b_ref[l])
            qkv = jnp.dot(h.astype(cdt), w_qkv_ref[l],
                          preferred_element_type=jnp.float32) + b_qkv_ref[l]   # [bt, 3W]

            def heads(col0, _qkv=qkv):
                # head-flatten via lane slices + sublane concat (no reshapes):
                # rows ordered (head, token) -> matches the host-built bias mask.
                return jnp.concatenate(
                    [_qkv[:, col0 + hd * HEAD_DIM: col0 + (hd + 1) * HEAD_DIM]
                     for hd in range(HEADS)], axis=0)               # [H*bt, Dh]

            qf, kf, vf = heads(0), heads(WIDTH), heads(2 * WIDTH)

            s = jax.lax.dot_general(qf.astype(cdt), kf.astype(cdt),
                                    (((1,), (1,)), ((), ())),
                                    preferred_element_type=jnp.float32)        # [H*bt, H*bt]
            s = s * ATTN_SCALE + bias
            s = s - jnp.max(s, axis=-1, keepdims=True)
            p = jnp.exp(s)
            p = p * pl.reciprocal(jnp.sum(p, axis=-1, keepdims=True), approx=True)
            o = jnp.dot(p.astype(cdt), vf.astype(cdt),
                        preferred_element_type=jnp.float32)                    # [H*bt, Dh]
            # concat heads back along lanes (column order = head-major, matches w_out rows)
            o_cat = jnp.concatenate(
                [o[hd * bt:(hd + 1) * bt, :] for hd in range(HEADS)], axis=1)  # [bt, W]
            x = x + jnp.dot(o_cat.astype(cdt), w_out_ref[l],
                            preferred_element_type=jnp.float32) + b_out_ref[l]

            # ---- MLP branch (QuickGELU, as in OpenAI CLIP) ----
            h = _ln(x, ln2_g_ref[l], ln2_b_ref[l])
            h = jnp.dot(h.astype(cdt), mlp_w1_ref[l],
                        preferred_element_type=jnp.float32) + mlp_b1_ref[l]
            h = h * jax.nn.sigmoid(1.702 * h)
            h = jnp.dot(h.astype(cdt), mlp_w2_ref[l],
                        preferred_element_type=jnp.float32) + mlp_b2_ref[l]
            x = x + h

        # --- epilogue: ln_post on the (contiguous) class-token rows + visual projection ---
        cls_out = _ln(x[0:chunk_imgs, :], ln_post_g_ref[...], ln_post_b_ref[...])
        o_ref[0] = jnp.dot(cls_out.astype(cdt), proj_ref[...],
                           preferred_element_type=jnp.float32)

    return kernel


# ---------------- parameter init (deterministic, synthetic) ----------------
def init_params(key):
    scale = 0.02
    ks = jax.random.split(key, 8)
    return {
        "conv_w": scale * jax.random.normal(ks[0], (CPP, WIDTH), jnp.float32),
        "class_embedding": scale * jax.random.normal(ks[1], (WIDTH,), jnp.float32),
        "positional_embedding": scale * jax.random.normal(ks[2], (TOKENS, WIDTH), jnp.float32),
        "ln_pre_g": jnp.ones((1, WIDTH), jnp.float32),
        "ln_pre_b": jnp.zeros((1, WIDTH), jnp.float32),
        "ln_post_g": jnp.ones((1, WIDTH), jnp.float32),
        "ln_post_b": jnp.zeros((1, WIDTH), jnp.float32),
        "proj": scale * jax.random.normal(ks[3], (WIDTH, EMBED_DIM), jnp.float32),
        # stacked per-layer weights, lane-dense layouts:
        "ln1_g": jnp.ones((LAYERS, 1, WIDTH), jnp.float32),
        "ln1_b": jnp.zeros((LAYERS, 1, WIDTH), jnp.float32),
        # fused QKV: columns = [Q | K | V], within each block column c = head*HEAD_DIM + dim
        # (torch in_proj_weight [3W, W] maps here via its transpose, with that column order).
        "w_qkv": scale * jax.random.normal(ks[4], (LAYERS, WIDTH, 3 * WIDTH), jnp.float32),
        "b_qkv": jnp.zeros((LAYERS, 1, 3 * WIDTH), jnp.float32),
        # out_proj: rows ordered head-major (torch out_proj.weight.T)
        "w_out": scale * jax.random.normal(ks[5], (LAYERS, WIDTH, WIDTH), jnp.float32),
        "b_out": jnp.zeros((LAYERS, 1, WIDTH), jnp.float32),
        "ln2_g": jnp.ones((LAYERS, 1, WIDTH), jnp.float32),
        "ln2_b": jnp.zeros((LAYERS, 1, WIDTH), jnp.float32),
        "mlp_w1": scale * jax.random.normal(ks[6], (LAYERS, WIDTH, MLP_HIDDEN), jnp.float32),
        "mlp_b1": jnp.zeros((LAYERS, 1, MLP_HIDDEN), jnp.float32),
        "mlp_w2": scale * jax.random.normal(ks[7], (LAYERS, MLP_HIDDEN, WIDTH), jnp.float32),
        "mlp_b2": jnp.zeros((LAYERS, 1, WIDTH), jnp.float32),
    }


# ---------------- forward pass (= model.encode_image) ----------------
def encode_image(images, params, *, batch_chunks=1, compute_dtype=jnp.bfloat16):
    """images: [B, C, H, W] (NCHW, PyTorch convention) -> [B, EMBED_DIM].

    batch_chunks: grid steps (each handles B/batch_chunks images).  Use 1 on
      v5e/v6e (single TensorCore); 2 on v7x so the "parallel" axis shards the
      batch across both TensorCores.
    compute_dtype: MXU input dtype.  bf16 is the v6e/v7x production path
      (accumulation is always f32); f32 is the exact path.
    """
    B, C, H_, W_ = images.shape
    assert (C, H_, W_) == (CHANNELS, IMG, IMG)
    assert B % batch_chunks == 0
    bc = B // batch_chunks
    cdt = compute_dtype

    # conv1 (kernel=stride=PATCH, no bias) == non-overlapping patch extraction (pure layout)
    patches = images.reshape(B, CHANNELS, GRID, PATCH, GRID, PATCH)
    patches = patches.transpose(0, 2, 4, 1, 3, 5).reshape(batch_chunks, bc * N_PATCHES, CPP)
    patches = patches.astype(cdt)

    pos = params["positional_embedding"]
    cls_pos = (params["class_embedding"] + pos[0])[None, :]          # [1, WIDTH]
    pos_patch = jnp.tile(pos[1:], (bc, 1))                           # [bc*N_PATCHES, WIDTH]
    bias = _attn_bias(bc)                                            # [H*bc*T, H*bc*T]

    def wcast(name):                     # MXU weight operands in compute dtype
        return params[name].astype(cdt)

    operands = (
        bias, wcast("conv_w"), cls_pos, pos_patch,
        params["ln_pre_g"], params["ln_pre_b"],
        params["ln1_g"], params["ln1_b"],
        wcast("w_qkv"), params["b_qkv"], wcast("w_out"), params["b_out"],
        params["ln2_g"], params["ln2_b"],
        wcast("mlp_w1"), params["mlp_b1"], wcast("mlp_w2"), params["mlp_b2"],
        params["ln_post_g"], params["ln_post_b"], wcast("proj"),
    )

    def const_spec(arr):                 # same block every grid step -> DMA'd once
        nd = arr.ndim
        return pl.BlockSpec(arr.shape, lambda c, _nd=nd: (0,) * _nd)

    flops = B * (2 * N_PATCHES * CPP * WIDTH
                 + LAYERS * (2 * TOKENS * WIDTH * 3 * WIDTH
                             + 4 * HEADS * TOKENS * TOKENS * HEAD_DIM
                             + 2 * TOKENS * WIDTH * WIDTH
                             + 4 * TOKENS * WIDTH * MLP_HIDDEN)
                 + 2 * WIDTH * EMBED_DIM)
    transcendentals = B * LAYERS * (HEADS * TOKENS * TOKENS + TOKENS * MLP_HIDDEN)
    bytes_accessed = int(patches.size * patches.dtype.itemsize
                         + sum(a.size * a.dtype.itemsize for a in operands)
                         + B * EMBED_DIM * 4)

    out = pl.pallas_call(
        _make_encoder_kernel(bc, cdt),
        out_shape=jax.ShapeDtypeStruct((batch_chunks, bc, EMBED_DIM), jnp.float32),
        grid=(batch_chunks,),
        in_specs=[pl.BlockSpec((1, bc * N_PATCHES, CPP), lambda c: (c, 0, 0))]
                + [const_spec(a) for a in operands],
        out_specs=pl.BlockSpec((1, bc, EMBED_DIM), lambda c: (c, 0, 0)),
        compiler_params=pltpu.CompilerParams(dimension_semantics=("parallel",)),
        cost_estimate=pl.CostEstimate(flops=flops, transcendentals=transcendentals,
                                      bytes_accessed=bytes_accessed),
    )(patches, *operands)

    return out.reshape(B, EMBED_DIM)


# ---------------- pure-JAX reference (numerical sanity check) ----------------
def _ln_ref(x, g, b):
    mean = jnp.mean(x, axis=-1, keepdims=True)
    var = jnp.mean((x - mean) ** 2, axis=-1, keepdims=True)
    return (x - mean) * jax.lax.rsqrt(var + LN_EPS) * g + b


def encode_image_ref(images, params):
    B = images.shape[0]
    patches = images.reshape(B, CHANNELS, GRID, PATCH, GRID, PATCH)
    patches = patches.transpose(0, 2, 4, 1, 3, 5).reshape(B, N_PATCHES, CPP)
    x = jnp.einsum("bpc,cw->bpw", patches, params["conv_w"])
    cls = jnp.broadcast_to(params["class_embedding"][None, None, :], (B, 1, WIDTH))
    x = jnp.concatenate([cls, x], axis=1) + params["positional_embedding"][None]
    x = _ln_ref(x, params["ln_pre_g"], params["ln_pre_b"])
    for l in range(LAYERS):
        h = _ln_ref(x, params["ln1_g"][l], params["ln1_b"][l])
        qkv = jnp.einsum("btw,wf->btf", h, params["w_qkv"][l]) + params["b_qkv"][l]
        q = qkv[..., 0 * WIDTH:1 * WIDTH].reshape(B, TOKENS, HEADS, HEAD_DIM)
        k = qkv[..., 1 * WIDTH:2 * WIDTH].reshape(B, TOKENS, HEADS, HEAD_DIM)
        v = qkv[..., 2 * WIDTH:3 * WIDTH].reshape(B, TOKENS, HEADS, HEAD_DIM)
        s = jnp.einsum("bqhd,bkhd->bhqk", q, k) * ATTN_SCALE
        p = jax.nn.softmax(s, axis=-1)
        o = jnp.einsum("bhqk,bkhd->bqhd", p, v).reshape(B, TOKENS, WIDTH)
        x = x + jnp.einsum("btw,wu->btu", o, params["w_out"][l]) + params["b_out"][l]
        h = _ln_ref(x, params["ln2_g"][l], params["ln2_b"][l])
        h = jnp.einsum("btw,wm->btm", h, params["mlp_w1"][l]) + params["mlp_b1"][l]
        h = h * jax.nn.sigmoid(1.702 * h)
        h = jnp.einsum("btm,mw->btw", h, params["mlp_w2"][l]) + params["mlp_b2"][l]
        x = x + h
    x_cls = _ln_ref(x[:, 0, :], params["ln_post_g"], params["ln_post_b"])
    return x_cls @ params["proj"]


if __name__ == "__main__":
    images = jax.random.normal(jax.random.PRNGKey(0), (2, CHANNELS, IMG, IMG), jnp.float32)
    params = init_params(jax.random.PRNGKey(42))

    ref = encode_image_ref(images, params)

    # f32 MXU inputs = exact path (tolerance covers the approx softmax reciprocal);
    # bf16 MXU inputs = v6e/v7x production path (tolerance covers bf16 rounding).
    for cdt, tol in ((jnp.float32, 5e-3), (jnp.bfloat16, 2e-2)):
        fn = jax.jit(functools.partial(encode_image, compute_dtype=cdt))
        emb = fn(images, params)
        jax.block_until_ready(emb)
        assert emb.shape == (2, EMBED_DIM) and emb.dtype == jnp.float32
        err = float(jnp.max(jnp.abs(emb - ref)))
        assert err < tol, f"compute_dtype={cdt}: max abs err {err} >= {tol}"

    print("KERNEL_OK")
</pallas_src>

<mosaic_0001>
module attributes {stable_mosaic.version = 11 : i64} {
  func.func @kernel(%arg0: i32, %arg1: memref<1x8x192xf32, #tpu.memory_space<vmem>>, %arg2: memref<40x40xf32, #tpu.memory_space<vmem>>, %arg3: memref<192x32xf32, #tpu.memory_space<vmem>>, %arg4: memref<1x32xf32, #tpu.memory_space<vmem>>, %arg5: memref<8x32xf32, #tpu.memory_space<vmem>>, %arg6: memref<1x32xf32, #tpu.memory_space<vmem>>, %arg7: memref<1x32xf32, #tpu.memory_space<vmem>>, %arg8: memref<2x1x32xf32, #tpu.memory_space<vmem>>, %arg9: memref<2x1x32xf32, #tpu.memory_space<vmem>>, %arg10: memref<2x32x96xf32, #tpu.memory_space<vmem>>, %arg11: memref<2x1x96xf32, #tpu.memory_space<vmem>>, %arg12: memref<2x32x32xf32, #tpu.memory_space<vmem>>, %arg13: memref<2x1x32xf32, #tpu.memory_space<vmem>>, %arg14: memref<2x1x32xf32, #tpu.memory_space<vmem>>, %arg15: memref<2x1x32xf32, #tpu.memory_space<vmem>>, %arg16: memref<2x32x128xf32, #tpu.memory_space<vmem>>, %arg17: memref<2x1x128xf32, #tpu.memory_space<vmem>>, %arg18: memref<2x128x32xf32, #tpu.memory_space<vmem>>, %arg19: memref<2x1x32xf32, #tpu.memory_space<vmem>>, %arg20: memref<1x32xf32, #tpu.memory_space<vmem>>, %arg21: memref<1x32xf32, #tpu.memory_space<vmem>>, %arg22: memref<32x16xf32, #tpu.memory_space<vmem>>, %arg23: memref<1x2x16xf32, #tpu.memory_space<vmem>>) attributes {dimension_semantics = [#tpu.dimension_semantics<parallel>], iteration_bounds = array<i64: 1>, scalar_prefetch = 0 : i64, scratch_operands = 0 : i64, tpu.core_type = #tpu.core_type<tc>, window_params = [{transform_indices = @transform_0, window_bounds = array<i64: 1, 8, 192>}, {pipeline_mode = #tpu.pipeline_mode<synchronous>, transform_indices = @transform_1, window_bounds = array<i64: 40, 40>}, {pipeline_mode = #tpu.pipeline_mode<synchronous>, transform_indices = @transform_2, window_bounds = array<i64: 192, 32>}, {pipeline_mode = #tpu.pipeline_mode<synchronous>, transform_indices = @transform_3, window_bounds = array<i64: 1, 32>}, {pipeline_mode = #tpu.pipeline_mode<synchronous>, transform_indices = @transform_4, window_bounds = array<i64: 8, 32>}, {pipeline_mode = #tpu.pipeline_mode<synchronous>, transform_indices = @transform_5, window_bounds = array<i64: 1, 32>}, {pipeline_mode = #tpu.pipeline_mode<synchronous>, transform_indices = @transform_6, window_bounds = array<i64: 1, 32>}, {pipeline_mode = #tpu.pipeline_mode<synchronous>, transform_indices = @transform_7, window_bounds = array<i64: 2, 1, 32>}, {pipeline_mode = #tpu.pipeline_mode<synchronous>, transform_indices = @transform_8, window_bounds = array<i64: 2, 1, 32>}, {pipeline_mode = #tpu.pipeline_mode<synchronous>, transform_indices = @transform_9, window_bounds = array<i64: 2, 32, 96>}, {pipeline_mode = #tpu.pipeline_mode<synchronous>, transform_indices = @transform_10, window_bounds = array<i64: 2, 1, 96>}, {pipeline_mode = #tpu.pipeline_mode<synchronous>, transform_indices = @transform_11, window_bounds = array<i64: 2, 32, 32>}, {pipeline_mode = #tpu.pipeline_mode<synchronous>, transform_indices = @transform_12, window_bounds = array<i64: 2, 1, 32>}, {pipeline_mode = #tpu.pipeline_mode<synchronous>, transform_indices = @transform_13, window_bounds = array<i64: 2, 1, 32>}, {pipeline_mode = #tpu.pipeline_mode<synchronous>, transform_indices = @transform_14, window_bounds = array<i64: 2, 1, 32>}, {pipeline_mode = #tpu.pipeline_mode<synchronous>, transform_indices = @transform_15, window_bounds = array<i64: 2, 32, 128>}, {pipeline_mode = #tpu.pipeline_mode<synchronous>, transform_indices = @transform_16, window_bounds = array<i64: 2, 1, 128>}, {pipeline_mode = #tpu.pipeline_mode<synchronous>, transform_indices = @transform_17, window_bounds = array<i64: 2, 128, 32>}, {pipeline_mode = #tpu.pipeline_mode<synchronous>, transform_indices = @transform_18, window_bounds = array<i64: 2, 1, 32>}, {pipeline_mode = #tpu.pipeline_mode<synchronous>, transform_indices = @transform_19, window_bounds = array<i64: 1, 32>}, {pipeline_mode = #tpu.pipeline_mode<synchronous>, transform_indices = @transform_20, window_bounds = array<i64: 1, 32>}, {pipeline_mode = #tpu.pipeline_mode<synchronous>, transform_indices = @transform_21, window_bounds = array<i64: 32, 16>}, {transform_indices = @transform_22, window_bounds = array<i64: 1, 2, 16>}]} {
    %c0 = arith.constant 0 : index
    %c0_0 = arith.constant 0 : index
    %c0_1 = arith.constant 0 : index
    %0 = vector.load %arg1[%c0, %c0_0, %c0_1] : memref<1x8x192xf32, #tpu.memory_space<vmem>>, vector<1x8x192xf32>
    %1 = vector.shape_cast %0 : vector<1x8x192xf32> to vector<8x192xf32>
    %c0_2 = arith.constant 0 : index
    %c0_3 = arith.constant 0 : index
    %2 = vector.load %arg3[%c0_2, %c0_3] : memref<192x32xf32, #tpu.memory_space<vmem>>, vector<192x32xf32>
    %cst = arith.constant dense<0.000000e+00> : vector<8x32xf32>
    %3 = tpu.matmul %1, %2, %cst {dimension_numbers = #tpu.dot_dimension_numbers<[1], [0], [0], [1], [0, 0, 1, 1], [], []>} : vector<8x192xf32>, vector<192x32xf32>, vector<8x32xf32> -> vector<8x32xf32>
    %c0_4 = arith.constant 0 : index
    %c0_5 = arith.constant 0 : index
    %4 = vector.load %arg5[%c0_4, %c0_5] : memref<8x32xf32, #tpu.memory_space<vmem>>, vector<8x32xf32>
    %5 = arith.addf %3, %4 : vector<8x32xf32>
    %c0_6 = arith.constant 0 : index
    %c0_7 = arith.constant 0 : index
    %6 = vector.load %arg4[%c0_6, %c0_7] : memref<1x32xf32, #tpu.memory_space<vmem>>, vector<1x32xf32>
    %7 = vector.shape_cast %6 : vector<1x32xf32> to vector<1x32xf32>
    %8 = vector.broadcast %7 : vector<1x32xf32> to vector<2x32xf32>
    %9 = tpu.concatenate %8, %5 in 0 : vector<2x32xf32>, vector<8x32xf32> -> vector<10x32xf32>
    %c0_8 = arith.constant 0 : index
    %c0_9 = arith.constant 0 : index
    %10 = vector.load %arg6[%c0_8, %c0_9] : memref<1x32xf32, #tpu.memory_space<vmem>>, vector<1x32xf32>
    %c0_10 = arith.constant 0 : index
    %c0_11 = arith.constant 0 : index
    %11 = vector.load %arg7[%c0_10, %c0_11] : memref<1x32xf32, #tpu.memory_space<vmem>>, vector<1x32xf32>
    %cst_12 = arith.constant dense<0.000000e+00> : vector<10xf32>
    %12 = vector.multi_reduction <add>, %9, %cst_12 [1] : vector<10x32xf32> to vector<10xf32>
    %13 = vector.shape_cast %12 : vector<10xf32> to vector<10x1xf32>
    %cst_13 = arith.constant 3.200000e+01 : f32
    %14 = vector.broadcast %cst_13 : f32 to vector<10x1xf32>
    %15 = arith.divf %13, %14 : vector<10x1xf32>
    %16 = vector.broadcast %15 : vector<10x1xf32> to vector<10x32xf32>
    %17 = arith.subf %9, %16 : vector<10x32xf32>
    %18 = arith.mulf %17, %17 : vector<10x32xf32>
    %cst_14 = arith.constant dense<0.000000e+00> : vector<10xf32>
    %19 = vector.multi_reduction <add>, %18, %cst_14 [1] : vector<10x32xf32> to vector<10xf32>
    %20 = vector.shape_cast %19 : vector<10xf32> to vector<10x1xf32>
    %cst_15 = arith.constant 3.200000e+01 : f32
    %21 = vector.broadcast %cst_15 : f32 to vector<10x1xf32>
    %22 = arith.divf %20, %21 : vector<10x1xf32>
    %cst_16 = arith.constant 9.99999974E-6 : f32
    %23 = vector.broadcast %cst_16 : f32 to vector<10x1xf32>
    %24 = arith.addf %22, %23 : vector<10x1xf32>
    %25 = math.rsqrt %24 : vector<10x1xf32>
    %26 = vector.broadcast %25 : vector<10x1xf32> to vector<10x32xf32>
    %27 = arith.mulf %17, %26 : vector<10x32xf32>
    %28 = vector.broadcast %10 : vector<1x32xf32> to vector<10x32xf32>
    %29 = arith.mulf %27, %28 : vector<10x32xf32>
    %30 = vector.broadcast %11 : vector<1x32xf32> to vector<10x32xf32>
    %31 = arith.addf %29, %30 : vector<10x32xf32>
    %c0_17 = arith.constant 0 : index
    %c0_18 = arith.constant 0 : index
    %32 = vector.load %arg2[%c0_17, %c0_18] : memref<40x40xf32, #tpu.memory_space<vmem>>, vector<40x40xf32>
    %c0_19 = arith.constant 0 : index
    %c0_20 = arith.constant 0 : index
    %c0_21 = arith.constant 0 : index
    %33 = vector.load %arg8[%c0_19, %c0_20, %c0_21] : memref<2x1x32xf32, #tpu.memory_space<vmem>>, vector<1x1x32xf32>
    %34 = vector.shape_cast %33 : vector<1x1x32xf32> to vector<1x32xf32>
    %c0_22 = arith.constant 0 : index
    %c0_23 = arith.constant 0 : index
    %c0_24 = arith.constant 0 : index
    %35 = vector.load %arg9[%c0_22, %c0_23, %c0_24] : memref<2x1x32xf32, #tpu.memory_space<vmem>>, vector<1x1x32xf32>
    %36 = vector.shape_cast %35 : vector<1x1x32xf32> to vector<1x32xf32>
    %cst_25 = arith.constant dense<0.000000e+00> : vector<10xf32>
    %37 = vector.multi_reduction <add>, %31, %cst_25 [1] : vector<10x32xf32> to vector<10xf32>
    %38 = vector.shape_cast %37 : vector<10xf32> to vector<10x1xf32>
    %cst_26 = arith.constant 3.200000e+01 : f32
    %39 = vector.broadcast %cst_26 : f32 to vector<10x1xf32>
    %40 = arith.divf %38, %39 : vector<10x1xf32>
    %41 = vector.broadcast %40 : vector<10x1xf32> to vector<10x32xf32>
    %42 = arith.subf %31, %41 : vector<10x32xf32>
    %43 = arith.mulf %42, %42 : vector<10x32xf32>
    %cst_27 = arith.constant dense<0.000000e+00> : vector<10xf32>
    %44 = vector.multi_reduction <add>, %43, %cst_27 [1] : vector<10x32xf32> to vector<10xf32>
    %45 = vector.shape_cast %44 : vector<10xf32> to vector<10x1xf32>
    %cst_28 = arith.constant 3.200000e+01 : f32
    %46 = vector.broadcast %cst_28 : f32 to vector<10x1xf32>
    %47 = arith.divf %45, %46 : vector<10x1xf32>
    %cst_29 = arith.constant 9.99999974E-6 : f32
    %48 = vector.broadcast %cst_29 : f32 to vector<10x1xf32>
    %49 = arith.addf %47, %48 : vector<10x1xf32>
    %50 = math.rsqrt %49 : vector<10x1xf32>
    %51 = vector.broadcast %50 : vector<10x1xf32> to vector<10x32xf32>
    %52 = arith.mulf %42, %51 : vector<10x32xf32>
    %53 = vector.broadcast %34 : vector<1x32xf32> to vector<10x32xf32>
    %54 = arith.mulf %52, %53 : vector<10x32xf32>
    %55 = vector.broadcast %36 : vector<1x32xf32> to vector<10x32xf32>
    %56 = arith.addf %54, %55 : vector<10x32xf32>
    %c0_30 = arith.constant 0 : index
    %c0_31 = arith.constant 0 : index
    %c0_32 = arith.constant 0 : index
    %57 = vector.load %arg10[%c0_30, %c0_31, %c0_32] : memref<2x32x96xf32, #tpu.memory_space<vmem>>, vector<1x32x96xf32>
    %58 = vector.shape_cast %57 : vector<1x32x96xf32> to vector<32x96xf32>
    %cst_33 = arith.constant dense<0.000000e+00> : vector<10x96xf32>
    %59 = tpu.matmul %56, %58, %cst_33 {dimension_numbers = #tpu.dot_dimension_numbers<[1], [0], [0], [1], [0, 0, 1, 1], [], []>} : vector<10x32xf32>, vector<32x96xf32>, vector<10x96xf32> -> vector<10x96xf32>
    %c0_34 = arith.constant 0 : index
    %c0_35 = arith.constant 0 : index
    %c0_36 = arith.constant 0 : index
    %60 = vector.load %arg11[%c0_34, %c0_35, %c0_36] : memref<2x1x96xf32, #tpu.memory_space<vmem>>, vector<1x1x96xf32>
    %61 = vector.shape_cast %60 : vector<1x1x96xf32> to vector<1x96xf32>
    %62 = vector.broadcast %61 : vector<1x96xf32> to vector<10x96xf32>
    %63 = arith.addf %59, %62 : vector<10x96xf32>
    %64 = vector.extract_strided_slice %63 {offsets = [0, 0], sizes = [10, 8], strides = [1, 1]} : vector<10x96xf32> to vector<10x8xf32>
    %65 = vector.extract_strided_slice %63 {offsets = [0, 8], sizes = [10, 8], strides = [1, 1]} : vector<10x96xf32> to vector<10x8xf32>
    %66 = vector.extract_strided_slice %63 {offsets = [0, 16], sizes = [10, 8], strides = [1, 1]} : vector<10x96xf32> to vector<10x8xf32>
    %67 = vector.extract_strided_slice %63 {offsets = [0, 24], sizes = [10, 8], strides = [1, 1]} : vector<10x96xf32> to vector<10x8xf32>
    %68 = tpu.concatenate %64, %65, %66, %67 in 0 : vector<10x8xf32>, vector<10x8xf32>, vector<10x8xf32>, vector<10x8xf32> -> vector<40x8xf32>
    %69 = vector.extract_strided_slice %63 {offsets = [0, 32], sizes = [10, 8], strides = [1, 1]} : vector<10x96xf32> to vector<10x8xf32>
    %70 = vector.extract_strided_slice %63 {offsets = [0, 40], sizes = [10, 8], strides = [1, 1]} : vector<10x96xf32> to vector<10x8xf32>
    %71 = vector.extract_strided_slice %63 {offsets = [0, 48], sizes = [10, 8], strides = [1, 1]} : vector<10x96xf32> to vector<10x8xf32>
    %72 = vector.extract_strided_slice %63 {offsets = [0, 56], sizes = [10, 8], strides = [1, 1]} : vector<10x96xf32> to vector<10x8xf32>
    %73 = tpu.concatenate %69, %70, %71, %72 in 0 : vector<10x8xf32>, vector<10x8xf32>, vector<10x8xf32>, vector<10x8xf32> -> vector<40x8xf32>
    %74 = vector.extract_strided_slice %63 {offsets = [0, 64], sizes = [10, 8], strides = [1, 1]} : vector<10x96xf32> to vector<10x8xf32>
    %75 = vector.extract_strided_slice %63 {offsets = [0, 72], sizes = [10, 8], strides = [1, 1]} : vector<10x96xf32> to vector<10x8xf32>
    %76 = vector.extract_strided_slice %63 {offsets = [0, 80], sizes = [10, 8], strides = [1, 1]} : vector<10x96xf32> to vector<10x8xf32>
    %77 = vector.extract_strided_slice %63 {offsets = [0, 88], sizes = [10, 8], strides = [1, 1]} : vector<10x96xf32> to vector<10x8xf32>
    %78 = tpu.concatenate %74, %75, %76, %77 in 0 : vector<10x8xf32>, vector<10x8xf32>, vector<10x8xf32>, vector<10x8xf32> -> vector<40x8xf32>
    %cst_37 = arith.constant dense<0.000000e+00> : vector<40x40xf32>
    %79 = tpu.matmul %68, %73, %cst_37 {dimension_numbers = #tpu.dot_dimension_numbers<[1], [1], [0], [0], [0, 0, 1, 0], [], []>} : vector<40x8xf32>, vector<40x8xf32>, vector<40x40xf32> -> vector<40x40xf32>
    %cst_38 = arith.constant 0.353553385 : f32
    %80 = vector.broadcast %cst_38 : f32 to vector<40x40xf32>
    %81 = arith.mulf %79, %80 : vector<40x40xf32>
    %82 = arith.addf %81, %32 : vector<40x40xf32>
    %cst_39 = arith.constant dense<0xFF800000> : vector<40xf32>
    %83 = vector.multi_reduction <maximumf>, %82, %cst_39 [1] : vector<40x40xf32> to vector<40xf32>
    %84 = vector.shape_cast %83 : vector<40xf32> to vector<40x1xf32>
    %85 = vector.broadcast %84 : vector<40x1xf32> to vector<40x40xf32>
    %86 = arith.subf %82, %85 : vector<40x40xf32>
    %87 = math.exp %86 : vector<40x40xf32>
    %cst_40 = arith.constant dense<0.000000e+00> : vector<40xf32>
    %88 = vector.multi_reduction <add>, %87, %cst_40 [1] : vector<40x40xf32> to vector<40xf32>
    %89 = vector.shape_cast %88 : vector<40xf32> to vector<40x1xf32>
    %90 = tpu.reciprocal %89 {approx = true} : vector<40x1xf32> -> vector<40x1xf32>
    %91 = vector.broadcast %90 : vector<40x1xf32> to vector<40x40xf32>
    %92 = arith.mulf %87, %91 : vector<40x40xf32>
    %cst_41 = arith.constant dense<0.000000e+00> : vector<40x8xf32>
    %93 = tpu.matmul %92, %78, %cst_41 {dimension_numbers = #tpu.dot_dimension_numbers<[1], [0], [0], [1], [0, 0, 1, 1], [], []>} : vector<40x40xf32>, vector<40x8xf32>, vector<40x8xf32> -> vector<40x8xf32>
    %94 = vector.extract_strided_slice %93 {offsets = [0, 0], sizes = [10, 8], strides = [1, 1]} : vector<40x8xf32> to vector<10x8xf32>
    %95 = vector.extract_strided_slice %93 {offsets = [10, 0], sizes = [10, 8], strides = [1, 1]} : vector<40x8xf32> to vector<10x8xf32>
    %96 = vector.extract_strided_slice %93 {offsets = [20, 0], sizes = [10, 8], strides = [1, 1]} : vector<40x8xf32> to vector<10x8xf32>
    %97 = vector.extract_strided_slice %93 {offsets = [30, 0], sizes = [10, 8], strides = [1, 1]} : vector<40x8xf32> to vector<10x8xf32>
    %98 = tpu.concatenate %94, %95, %96, %97 in 1 : vector<10x8xf32>, vector<10x8xf32>, vector<10x8xf32>, vector<10x8xf32> -> vector<10x32xf32>
    %c0_42 = arith.constant 0 : index
    %c0_43 = arith.constant 0 : index
    %c0_44 = arith.constant 0 : index
    %99 = vector.load %arg12[%c0_42, %c0_43, %c0_44] : memref<2x32x32xf32, #tpu.memory_space<vmem>>, vector<1x32x32xf32>
    %100 = vector.shape_cast %99 : vector<1x32x32xf32> to vector<32x32xf32>
    %cst_45 = arith.constant dense<0.000000e+00> : vector<10x32xf32>
    %101 = tpu.matmul %98, %100, %cst_45 {dimension_numbers = #tpu.dot_dimension_numbers<[1], [0], [0], [1], [0, 0, 1, 1], [], []>} : vector<10x32xf32>, vector<32x32xf32>, vector<10x32xf32> -> vector<10x32xf32>
    %102 = arith.addf %31, %101 : vector<10x32xf32>
    %c0_46 = arith.constant 0 : index
    %c0_47 = arith.constant 0 : index
    %c0_48 = arith.constant 0 : index
    %103 = vector.load %arg13[%c0_46, %c0_47, %c0_48] : memref<2x1x32xf32, #tpu.memory_space<vmem>>, vector<1x1x32xf32>
    %104 = vector.shape_cast %103 : vector<1x1x32xf32> to vector<1x32xf32>
    %105 = vector.broadcast %104 : vector<1x32xf32> to vector<10x32xf32>
    %106 = arith.addf %102, %105 : vector<10x32xf32>
    %c0_49 = arith.constant 0 : index
    %c0_50 = arith.constant 0 : index
    %c0_51 = arith.constant 0 : index
    %107 = vector.load %arg14[%c0_49, %c0_50, %c0_51] : memref<2x1x32xf32, #tpu.memory_space<vmem>>, vector<1x1x32xf32>
    %108 = vector.shape_cast %107 : vector<1x1x32xf32> to vector<1x32xf32>
    %c0_52 = arith.constant 0 : index
    %c0_53 = arith.constant 0 : index
    %c0_54 = arith.constant 0 : index
    %109 = vector.load %arg15[%c0_52, %c0_53, %c0_54] : memref<2x1x32xf32, #tpu.memory_space<vmem>>, vector<1x1x32xf32>
    %110 = vector.shape_cast %109 : vector<1x1x32xf32> to vector<1x32xf32>
    %cst_55 = arith.constant dense<0.000000e+00> : vector<10xf32>
    %111 = vector.multi_reduction <add>, %106, %cst_55 [1] : vector<10x32xf32> to vector<10xf32>
    %112 = vector.shape_cast %111 : vector<10xf32> to vector<10x1xf32>
    %cst_56 = arith.constant 3.200000e+01 : f32
    %113 = vector.broadcast %cst_56 : f32 to vector<10x1xf32>
    %114 = arith.divf %112, %113 : vector<10x1xf32>
    %115 = vector.broadcast %114 : vector<10x1xf32> to vector<10x32xf32>
    %116 = arith.subf %106, %115 : vector<10x32xf32>
    %117 = arith.mulf %116, %116 : vector<10x32xf32>
    %cst_57 = arith.constant dense<0.000000e+00> : vector<10xf32>
    %118 = vector.multi_reduction <add>, %117, %cst_57 [1] : vector<10x32xf32> to vector<10xf32>
    %119 = vector.shape_cast %118 : vector<10xf32> to vector<10x1xf32>
    %cst_58 = arith.constant 3.200000e+01 : f32
    %120 = vector.broadcast %cst_58 : f32 to vector<10x1xf32>
    %121 = arith.divf %119, %120 : vector<10x1xf32>
    %cst_59 = arith.constant 9.99999974E-6 : f32
    %122 = vector.broadcast %cst_59 : f32 to vector<10x1xf32>
    %123 = arith.addf %121, %122 : vector<10x1xf32>
    %124 = math.rsqrt %123 : vector<10x1xf32>
    %125 = vector.broadcast %124 : vector<10x1xf32> to vector<10x32xf32>
    %126 = arith.mulf %116, %125 : vector<10x32xf32>
    %127 = vector.broadcast %108 : vector<1x32xf32> to vector<10x32xf32>
    %128 = arith.mulf %126, %127 : vector<10x32xf32>
    %129 = vector.broadcast %110 : vector<1x32xf32> to vector<10x32xf32>
    %130 = arith.addf %128, %129 : vector<10x32xf32>
    %c0_60 = arith.constant 0 : index
    %c0_61 = arith.constant 0 : index
    %c0_62 = arith.constant 0 : index
    %131 = vector.load %arg16[%c0_60, %c0_61, %c0_62] : memref<2x32x128xf32, #tpu.memory_space<vmem>>, vector<1x32x128xf32>
    %132 = vector.shape_cast %131 : vector<1x32x128xf32> to vector<32x128xf32>
    %cst_63 = arith.constant dense<0.000000e+00> : vector<10x128xf32>
    %133 = tpu.matmul %130, %132, %cst_63 {dimension_numbers = #tpu.dot_dimension_numbers<[1], [0], [0], [1], [0, 0, 1, 1], [], []>} : vector<10x32xf32>, vector<32x128xf32>, vector<10x128xf32> -> vector<10x128xf32>
    %c0_64 = arith.constant 0 : index
    %c0_65 = arith.constant 0 : index
    %c0_66 = arith.constant 0 : index
    %134 = vector.load %arg17[%c0_64, %c0_65, %c0_66] : memref<2x1x128xf32, #tpu.memory_space<vmem>>, vector<1x1x128xf32>
    %135 = vector.shape_cast %134 : vector<1x1x128xf32> to vector<1x128xf32>
    %136 = vector.broadcast %135 : vector<1x128xf32> to vector<10x128xf32>
    %137 = arith.addf %133, %136 : vector<10x128xf32>
    %cst_67 = arith.constant 1.702000e+00 : f32
    %138 = vector.broadcast %cst_67 : f32 to vector<10x128xf32>
    %139 = arith.mulf %138, %137 : vector<10x128xf32>
    %140 = arith.negf %139 : vector<10x128xf32>
    %141 = math.exp %140 : vector<10x128xf32>
    %cst_68 = arith.constant 1.000000e+00 : f32
    %142 = vector.broadcast %cst_68 : f32 to vector<10x128xf32>
    %143 = arith.addf %142, %141 : vector<10x128xf32>
    %144 = arith.divf %142, %143 : vector<10x128xf32>
    %145 = arith.mulf %137, %144 : vector<10x128xf32>
    %c0_69 = arith.constant 0 : index
    %c0_70 = arith.constant 0 : index
    %c0_71 = arith.constant 0 : index
    %146 = vector.load %arg18[%c0_69, %c0_70, %c0_71] : memref<2x128x32xf32, #tpu.memory_space<vmem>>, vector<1x128x32xf32>
    %147 = vector.shape_cast %146 : vector<1x128x32xf32> to vector<128x32xf32>
    %cst_72 = arith.constant dense<0.000000e+00> : vector<10x32xf32>
    %148 = tpu.matmul %145, %147, %cst_72 {dimension_numbers = #tpu.dot_dimension_numbers<[1], [0], [0], [1], [0, 0, 1, 1], [], []>} : vector<10x128xf32>, vector<128x32xf32>, vector<10x32xf32> -> vector<10x32xf32>
    %c0_73 = arith.constant 0 : index
    %c0_74 = arith.constant 0 : index
    %c0_75 = arith.constant 0 : index
    %149 = vector.load %arg19[%c0_73, %c0_74, %c0_75] : memref<2x1x32xf32, #tpu.memory_space<vmem>>, vector<1x1x32xf32>
    %150 = vector.shape_cast %149 : vector<1x1x32xf32> to vector<1x32xf32>
    %151 = vector.broadcast %150 : vector<1x32xf32> to vector<10x32xf32>
    %152 = arith.addf %148, %151 : vector<10x32xf32>
    %153 = arith.addf %106, %152 : vector<10x32xf32>
    %c1 = arith.constant 1 : index
    %c0_76 = arith.constant 0 : index
    %c0_77 = arith.constant 0 : index
    %154 = vector.load %arg8[%c1, %c0_76, %c0_77] : memref<2x1x32xf32, #tpu.memory_space<vmem>>, vector<1x1x32xf32>
    %155 = vector.shape_cast %154 : vector<1x1x32xf32> to vector<1x32xf32>
    %c1_78 = arith.constant 1 : index
    %c0_79 = arith.constant 0 : index
    %c0_80 = arith.constant 0 : index
    %156 = vector.load %arg9[%c1_78, %c0_79, %c0_80] : memref<2x1x32xf32, #tpu.memory_space<vmem>>, vector<1x1x32xf32>
    %157 = vector.shape_cast %156 : vector<1x1x32xf32> to vector<1x32xf32>
    %cst_81 = arith.constant dense<0.000000e+00> : vector<10xf32>
    %158 = vector.multi_reduction <add>, %153, %cst_81 [1] : vector<10x32xf32> to vector<10xf32>
    %159 = vector.shape_cast %158 : vector<10xf32> to vector<10x1xf32>
    %cst_82 = arith.constant 3.200000e+01 : f32
    %160 = vector.broadcast %cst_82 : f32 to vector<10x1xf32>
    %161 = arith.divf %159, %160 : vector<10x1xf32>
    %162 = vector.broadcast %161 : vector<10x1xf32> to vector<10x32xf32>
    %163 = arith.subf %153, %162 : vector<10x32xf32>
    %164 = arith.mulf %163, %163 : vector<10x32xf32>
    %cst_83 = arith.constant dense<0.000000e+00> : vector<10xf32>
    %165 = vector.multi_reduction <add>, %164, %cst_83 [1] : vector<10x32xf32> to vector<10xf32>
    %166 = vector.shape_cast %165 : vector<10xf32> to vector<10x1xf32>
    %cst_84 = arith.constant 3.200000e+01 : f32
    %167 = vector.broadcast %cst_84 : f32 to vector<10x1xf32>
    %168 = arith.divf %166, %167 : vector<10x1xf32>
    %cst_85 = arith.constant 9.99999974E-6 : f32
    %169 = vector.broadcast %cst_85 : f32 to vector<10x1xf32>
    %170 = arith.addf %168, %169 : vector<10x1xf32>
    %171 = math.rsqrt %170 : vector<10x1xf32>
    %172 = vector.broadcast %171 : vector<10x1xf32> to vector<10x32xf32>
    %173 = arith.mulf %163, %172 : vector<10x32xf32>
    %174 = vector.broadcast %155 : vector<1x32xf32> to vector<10x32xf32>
    %175 = arith.mulf %173, %174 : vector<10x32xf32>
    %176 = vector.broadcast %157 : vector<1x32xf32> to vector<10x32xf32>
    %177 = arith.addf %175, %176 : vector<10x32xf32>
    %c1_86 = arith.constant 1 : index
    %c0_87 = arith.constant 0 : index
    %c0_88 = arith.constant 0 : index
    %178 = vector.load %arg10[%c1_86, %c0_87, %c0_88] : memref<2x32x96xf32, #tpu.memory_space<vmem>>, vector<1x32x96xf32>
    %179 = vector.shape_cast %178 : vector<1x32x96xf32> to vector<32x96xf32>
    %cst_89 = arith.constant dense<0.000000e+00> : vector<10x96xf32>
    %180 = tpu.matmul %177, %179, %cst_89 {dimension_numbers = #tpu.dot_dimension_numbers<[1], [0], [0], [1], [0, 0, 1, 1], [], []>} : vector<10x32xf32>, vector<32x96xf32>, vector<10x96xf32> -> vector<10x96xf32>
    %c1_90 = arith.constant 1 : index
    %c0_91 = arith.constant 0 : index
    %c0_92 = arith.constant 0 : index
    %181 = vector.load %arg11[%c1_90, %c0_91, %c0_92] : memref<2x1x96xf32, #tpu.memory_space<vmem>>, vector<1x1x96xf32>
    %182 = vector.shape_cast %181 : vector<1x1x96xf32> to vector<1x96xf32>
    %183 = vector.broadcast %182 : vector<1x96xf32> to vector<10x96xf32>
    %184 = arith.addf %180, %183 : vector<10x96xf32>
    %185 = vector.extract_strided_slice %184 {offsets = [0, 0], sizes = [10, 8], strides = [1, 1]} : vector<10x96xf32> to vector<10x8xf32>
    %186 = vector.extract_strided_slice %184 {offsets = [0, 8], sizes = [10, 8], strides = [1, 1]} : vector<10x96xf32> to vector<10x8xf32>
    %187 = vector.extract_strided_slice %184 {offsets = [0, 16], sizes = [10, 8], strides = [1, 1]} : vector<10x96xf32> to vector<10x8xf32>
    %188 = vector.extract_strided_slice %184 {offsets = [0, 24], sizes = [10, 8], strides = [1, 1]} : vector<10x96xf32> to vector<10x8xf32>
    %189 = tpu.concatenate %185, %186, %187, %188 in 0 : vector<10x8xf32>, vector<10x8xf32>, vector<10x8xf32>, vector<10x8xf32> -> vector<40x8xf32>
    %190 = vector.extract_strided_slice %184 {offsets = [0, 32], sizes = [10, 8], strides = [1, 1]} : vector<10x96xf32> to vector<10x8xf32>
    %191 = vector.extract_strided_slice %184 {offsets = [0, 40], sizes = [10, 8], strides = [1, 1]} : vector<10x96xf32> to vector<10x8xf32>
    %192 = vector.extract_strided_slice %184 {offsets = [0, 48], sizes = [10, 8], strides = [1, 1]} : vector<10x96xf32> to vector<10x8xf32>
    %193 = vector.extract_strided_slice %184 {offsets = [0, 56], sizes = [10, 8], strides = [1, 1]} : vector<10x96xf32> to vector<10x8xf32>
    %194 = tpu.concatenate %190, %191, %192, %193 in 0 : vector<10x8xf32>, vector<10x8xf32>, vector<10x8xf32>, vector<10x8xf32> -> vector<40x8xf32>
    %195 = vector.extract_strided_slice %184 {offsets = [0, 64], sizes = [10, 8], strides = [1, 1]} : vector<10x96xf32> to vector<10x8xf32>
    %196 = vector.extract_strided_slice %184 {offsets = [0, 72], sizes = [10, 8], strides = [1, 1]} : vector<10x96xf32> to vector<10x8xf32>
    %197 = vector.extract_strided_slice %184 {offsets = [0, 80], sizes = [10, 8], strides = [1, 1]} : vector<10x96xf32> to vector<10x8xf32>
    %198 = vector.extract_strided_slice %184 {offsets = [0, 88], sizes = [10, 8], strides = [1, 1]} : vector<10x96xf32> to vector<10x8xf32>
    %199 = tpu.concatenate %195, %196, %197, %198 in 0 : vector<10x8xf32>, vector<10x8xf32>, vector<10x8xf32>, vector<10x8xf32> -> vector<40x8xf32>
    %cst_93 = arith.constant dense<0.000000e+00> : vector<40x40xf32>
    %200 = tpu.matmul %189, %194, %cst_93 {dimension_numbers = #tpu.dot_dimension_numbers<[1], [1], [0], [0], [0, 0, 1, 0], [], []>} : vector<40x8xf32>, vector<40x8xf32>, vector<40x40xf32> -> vector<40x40xf32>
    %cst_94 = arith.constant 0.353553385 : f32
    %201 = vector.broadcast %cst_94 : f32 to vector<40x40xf32>
    %202 = arith.mulf %200, %201 : vector<40x40xf32>
    %203 = arith.addf %202, %32 : vector<40x40xf32>
    %cst_95 = arith.constant dense<0xFF800000> : vector<40xf32>
    %204 = vector.multi_reduction <maximumf>, %203, %cst_95 [1] : vector<40x40xf32> to vector<40xf32>
    %205 = vector.shape_cast %204 : vector<40xf32> to vector<40x1xf32>
    %206 = vector.broadcast %205 : vector<40x1xf32> to vector<40x40xf32>
    %207 = arith.subf %203, %206 : vector<40x40xf32>
    %208 = math.exp %207 : vector<40x40xf32>
    %cst_96 = arith.constant dense<0.000000e+00> : vector<40xf32>
    %209 = vector.multi_reduction <add>, %208, %cst_96 [1] : vector<40x40xf32> to vector<40xf32>
    %210 = vector.shape_cast %209 : vector<40xf32> to vector<40x1xf32>
    %211 = tpu.reciprocal %210 {approx = true} : vector<40x1xf32> -> vector<40x1xf32>
    %212 = vector.broadcast %211 : vector<40x1xf32> to vector<40x40xf32>
    %213 = arith.mulf %208, %212 : vector<40x40xf32>
    %cst_97 = arith.constant dense<0.000000e+00> : vector<40x8xf32>
    %214 = tpu.matmul %213, %199, %cst_97 {dimension_numbers = #tpu.dot_dimension_numbers<[1], [0], [0], [1], [0, 0, 1, 1], [], []>} : vector<40x40xf32>, vector<40x8xf32>, vector<40x8xf32> -> vector<40x8xf32>
    %215 = vector.extract_strided_slice %214 {offsets = [0, 0], sizes = [10, 8], strides = [1, 1]} : vector<40x8xf32> to vector<10x8xf32>
    %216 = vector.extract_strided_slice %214 {offsets = [10, 0], sizes = [10, 8], strides = [1, 1]} : vector<40x8xf32> to vector<10x8xf32>
    %217 = vector.extract_strided_slice %214 {offsets = [20, 0], sizes = [10, 8], strides = [1, 1]} : vector<40x8xf32> to vector<10x8xf32>
    %218 = vector.extract_strided_slice %214 {offsets = [30, 0], sizes = [10, 8], strides = [1, 1]} : vector<40x8xf32> to vector<10x8xf32>
    %219 = tpu.concatenate %215, %216, %217, %218 in 1 : vector<10x8xf32>, vector<10x8xf32>, vector<10x8xf32>, vector<10x8xf32> -> vector<10x32xf32>
    %c1_98 = arith.constant 1 : index
    %c0_99 = arith.constant 0 : index
    %c0_100 = arith.constant 0 : index
    %220 = vector.load %arg12[%c1_98, %c0_99, %c0_100] : memref<2x32x32xf32, #tpu.memory_space<vmem>>, vector<1x32x32xf32>
    %221 = vector.shape_cast %220 : vector<1x32x32xf32> to vector<32x32xf32>
    %cst_101 = arith.constant dense<0.000000e+00> : vector<10x32xf32>
    %222 = tpu.matmul %219, %221, %cst_101 {dimension_numbers = #tpu.dot_dimension_numbers<[1], [0], [0], [1], [0, 0, 1, 1], [], []>} : vector<10x32xf32>, vector<32x32xf32>, vector<10x32xf32> -> vector<10x32xf32>
    %223 = arith.addf %153, %222 : vector<10x32xf32>
    %c1_102 = arith.constant 1 : index
    %c0_103 = arith.constant 0 : index
    %c0_104 = arith.constant 0 : index
    %224 = vector.load %arg13[%c1_102, %c0_103, %c0_104] : memref<2x1x32xf32, #tpu.memory_space<vmem>>, vector<1x1x32xf32>
    %225 = vector.shape_cast %224 : vector<1x1x32xf32> to vector<1x32xf32>
    %226 = vector.broadcast %225 : vector<1x32xf32> to vector<10x32xf32>
    %227 = arith.addf %223, %226 : vector<10x32xf32>
    %c1_105 = arith.constant 1 : index
    %c0_106 = arith.constant 0 : index
    %c0_107 = arith.constant 0 : index
    %228 = vector.load %arg14[%c1_105, %c0_106, %c0_107] : memref<2x1x32xf32, #tpu.memory_space<vmem>>, vector<1x1x32xf32>
    %229 = vector.shape_cast %228 : vector<1x1x32xf32> to vector<1x32xf32>
    %c1_108 = arith.constant 1 : index
    %c0_109 = arith.constant 0 : index
    %c0_110 = arith.constant 0 : index
    %230 = vector.load %arg15[%c1_108, %c0_109, %c0_110] : memref<2x1x32xf32, #tpu.memory_space<vmem>>, vector<1x1x32xf32>
    %231 = vector.shape_cast %230 : vector<1x1x32xf32> to vector<1x32xf32>
    %cst_111 = arith.constant dense<0.000000e+00> : vector<10xf32>
    %232 = vector.multi_reduction <add>, %227, %cst_111 [1] : vector<10x32xf32> to vector<10xf32>
    %233 = vector.shape_cast %232 : vector<10xf32> to vector<10x1xf32>
    %cst_112 = arith.constant 3.200000e+01 : f32
    %234 = vector.broadcast %cst_112 : f32 to vector<10x1xf32>
    %235 = arith.divf %233, %234 : vector<10x1xf32>
    %236 = vector.broadcast %235 : vector<10x1xf32> to vector<10x32xf32>
    %237 = arith.subf %227, %236 : vector<10x32xf32>
    %238 = arith.mulf %237, %237 : vector<10x32xf32>
    %cst_113 = arith.constant dense<0.000000e+00> : vector<10xf32>
    %239 = vector.multi_reduction <add>, %238, %cst_113 [1] : vector<10x32xf32> to vector<10xf32>
    %240 = vector.shape_cast %239 : vector<10xf32> to vector<10x1xf32>
    %cst_114 = arith.constant 3.200000e+01 : f32
    %241 = vector.broadcast %cst_114 : f32 to vector<10x1xf32>
    %242 = arith.divf %240, %241 : vector<10x1xf32>
    %cst_115 = arith.constant 9.99999974E-6 : f32
    %243 = vector.broadcast %cst_115 : f32 to vector<10x1xf32>
    %244 = arith.addf %242, %243 : vector<10x1xf32>
    %245 = math.rsqrt %244 : vector<10x1xf32>
    %246 = vector.broadcast %245 : vector<10x1xf32> to vector<10x32xf32>
    %247 = arith.mulf %237, %246 : vector<10x32xf32>
    %248 = vector.broadcast %229 : vector<1x32xf32> to vector<10x32xf32>
    %249 = arith.mulf %247, %248 : vector<10x32xf32>
    %250 = vector.broadcast %231 : vector<1x32xf32> to vector<10x32xf32>
    %251 = arith.addf %249, %250 : vector<10x32xf32>
    %c1_116 = arith.constant 1 : index
    %c0_117 = arith.constant 0 : index
    %c0_118 = arith.constant 0 : index
    %252 = vector.load %arg16[%c1_116, %c0_117, %c0_118] : memref<2x32x128xf32, #tpu.memory_space<vmem>>, vector<1x32x128xf32>
    %253 = vector.shape_cast %252 : vector<1x32x128xf32> to vector<32x128xf32>
    %cst_119 = arith.constant dense<0.000000e+00> : vector<10x128xf32>
    %254 = tpu.matmul %251, %253, %cst_119 {dimension_numbers = #tpu.dot_dimension_numbers<[1], [0], [0], [1], [0, 0, 1, 1], [], []>} : vector<10x32xf32>, vector<32x128xf32>, vector<10x128xf32> -> vector<10x128xf32>
    %c1_120 = arith.constant 1 : index
    %c0_121 = arith.constant 0 : index
    %c0_122 = arith.constant 0 : index
    %255 = vector.load %arg17[%c1_120, %c0_121, %c0_122] : memref<2x1x128xf32, #tpu.memory_space<vmem>>, vector<1x1x128xf32>
    %256 = vector.shape_cast %255 : vector<1x1x128xf32> to vector<1x128xf32>
    %257 = vector.broadcast %256 : vector<1x128xf32> to vector<10x128xf32>
    %258 = arith.addf %254, %257 : vector<10x128xf32>
    %cst_123 = arith.constant 1.702000e+00 : f32
    %259 = vector.broadcast %cst_123 : f32 to vector<10x128xf32>
    %260 = arith.mulf %259, %258 : vector<10x128xf32>
    %261 = arith.negf %260 : vector<10x128xf32>
    %262 = math.exp %261 : vector<10x128xf32>
    %cst_124 = arith.constant 1.000000e+00 : f32
    %263 = vector.broadcast %cst_124 : f32 to vector<10x128xf32>
    %264 = arith.addf %263, %262 : vector<10x128xf32>
    %265 = arith.divf %263, %264 : vector<10x128xf32>
    %266 = arith.mulf %258, %265 : vector<10x128xf32>
    %c1_125 = arith.constant 1 : index
    %c0_126 = arith.constant 0 : index
    %c0_127 = arith.constant 0 : index
    %267 = vector.load %arg18[%c1_125, %c0_126, %c0_127] : memref<2x128x32xf32, #tpu.memory_space<vmem>>, vector<1x128x32xf32>
    %268 = vector.shape_cast %267 : vector<1x128x32xf32> to vector<128x32xf32>
    %cst_128 = arith.constant dense<0.000000e+00> : vector<10x32xf32>
    %269 = tpu.matmul %266, %268, %cst_128 {dimension_numbers = #tpu.dot_dimension_numbers<[1], [0], [0], [1], [0, 0, 1, 1], [], []>} : vector<10x128xf32>, vector<128x32xf32>, vector<10x32xf32> -> vector<10x32xf32>
    %c1_129 = arith.constant 1 : index
    %c0_130 = arith.constant 0 : index
    %c0_131 = arith.constant 0 : index
    %270 = vector.load %arg19[%c1_129, %c0_130, %c0_131] : memref<2x1x32xf32, #tpu.memory_space<vmem>>, vector<1x1x32xf32>
    %271 = vector.shape_cast %270 : vector<1x1x32xf32> to vector<1x32xf32>
    %272 = vector.broadcast %271 : vector<1x32xf32> to vector<10x32xf32>
    %273 = arith.addf %269, %272 : vector<10x32xf32>
    %274 = arith.addf %227, %273 : vector<10x32xf32>
    %275 = vector.extract_strided_slice %274 {offsets = [0, 0], sizes = [2, 32], strides = [1, 1]} : vector<10x32xf32> to vector<2x32xf32>
    %c0_132 = arith.constant 0 : index
    %c0_133 = arith.constant 0 : index
    %276 = vector.load %arg20[%c0_132, %c0_133] : memref<1x32xf32, #tpu.memory_space<vmem>>, vector<1x32xf32>
    %c0_134 = arith.constant 0 : index
    %c0_135 = arith.constant 0 : index
    %277 = vector.load %arg21[%c0_134, %c0_135] : memref<1x32xf32, #tpu.memory_space<vmem>>, vector<1x32xf32>
    %cst_136 = arith.constant dense<0.000000e+00> : vector<2xf32>
    %278 = vector.multi_reduction <add>, %275, %cst_136 [1] : vector<2x32xf32> to vector<2xf32>
    %279 = vector.shape_cast %278 : vector<2xf32> to vector<2x1xf32>
    %cst_137 = arith.constant 3.200000e+01 : f32
    %280 = vector.broadcast %cst_137 : f32 to vector<2x1xf32>
    %281 = arith.divf %279, %280 : vector<2x1xf32>
    %282 = vector.broadcast %281 : vector<2x1xf32> to vector<2x32xf32>
    %283 = arith.subf %275, %282 : vector<2x32xf32>
    %284 = arith.mulf %283, %283 : vector<2x32xf32>
    %cst_138 = arith.constant dense<0.000000e+00> : vector<2xf32>
    %285 = vector.multi_reduction <add>, %284, %cst_138 [1] : vector<2x32xf32> to vector<2xf32>
    %286 = vector.shape_cast %285 : vector<2xf32> to vector<2x1xf32>
    %cst_139 = arith.constant 3.200000e+01 : f32
    %287 = vector.broadcast %cst_139 : f32 to vector<2x1xf32>
    %288 = arith.divf %286, %287 : vector<2x1xf32>
    %cst_140 = arith.constant 9.99999974E-6 : f32
    %289 = vector.broadcast %cst_140 : f32 to vector<2x1xf32>
    %290 = arith.addf %288, %289 : vector<2x1xf32>
    %291 = math.rsqrt %290 : vector<2x1xf32>
    %292 = vector.broadcast %291 : vector<2x1xf32> to vector<2x32xf32>
    %293 = arith.mulf %283, %292 : vector<2x32xf32>
    %294 = vector.broadcast %276 : vector<1x32xf32> to vector<2x32xf32>
    %295 = arith.mulf %293, %294 : vector<2x32xf32>
    %296 = vector.broadcast %277 : vector<1x32xf32> to vector<2x32xf32>
    %297 = arith.addf %295, %296 : vector<2x32xf32>
    %c0_141 = arith.constant 0 : index
    %c0_142 = arith.constant 0 : index
    %298 = vector.load %arg22[%c0_141, %c0_142] : memref<32x16xf32, #tpu.memory_space<vmem>>, vector<32x16xf32>
    %cst_143 = arith.constant dense<0.000000e+00> : vector<2x16xf32>
    %299 = tpu.matmul %297, %298, %cst_143 {dimension_numbers = #tpu.dot_dimension_numbers<[1], [0], [0], [1], [0, 0, 1, 1], [], []>} : vector<2x32xf32>, vector<32x16xf32>, vector<2x16xf32> -> vector<2x16xf32>
    %c0_144 = arith.constant 0 : index
    %c0_145 = arith.constant 0 : index
    %c0_146 = arith.constant 0 : index
    %300 = vector.load %arg23[%c0_144, %c0_145, %c0_146] : memref<1x2x16xf32, #tpu.memory_space<vmem>>, vector<1x2x16xf32>
    %301 = vector.shape_cast %300 : vector<1x2x16xf32> to vector<2x16xf32>
    %302 = vector.shape_cast %299 : vector<2x16xf32> to vector<1x2x16xf32>
    tpu.vector_store %arg23[%c0_144, %c0_145, %c0_146], %302 {strides = array<i32>} : memref<1x2x16xf32, #tpu.memory_space<vmem>>, vector<1x2x16xf32>,
    return
  }
  func.func @transform_0(%arg0: i32) -> (i32, i32, i32) {
    %c0_i32 = arith.constant 0 : i32
    %c0_i32_0 = arith.constant 0 : i32
    %c0_i32_1 = arith.constant 0 : i32
    return %arg0, %c0_i32, %c0_i32_0 : i32, i32, i32
  }
  func.func @transform_1(%arg0: i32) -> (i32, i32) {
    %c0_i32 = arith.constant 0 : i32
    %c0_i32_0 = arith.constant 0 : i32
    %c0_i32_1 = arith.constant 0 : i32
    return %c0_i32, %c0_i32_0 : i32, i32
  }
  func.func @transform_2(%arg0: i32) -> (i32, i32) {
    %c0_i32 = arith.constant 0 : i32
    %c0_i32_0 = arith.constant 0 : i32
    %c0_i32_1 = arith.constant 0 : i32
    return %c0_i32, %c0_i32_0 : i32, i32
  }
  func.func @transform_3(%arg0: i32) -> (i32, i32) {
    %c0_i32 = arith.constant 0 : i32
    %c0_i32_0 = arith.constant 0 : i32
    %c0_i32_1 = arith.constant 0 : i32
    return %c0_i32, %c0_i32_0 : i32, i32
  }
  func.func @transform_4(%arg0: i32) -> (i32, i32) {
    %c0_i32 = arith.constant 0 : i32
    %c0_i32_0 = arith.constant 0 : i32
    %c0_i32_1 = arith.constant 0 : i32
    return %c0_i32, %c0_i32_0 : i32, i32
  }
  func.func @transform_5(%arg0: i32) -> (i32, i32) {
    %c0_i32 = arith.constant 0 : i32
    %c0_i32_0 = arith.constant 0 : i32
    %c0_i32_1 = arith.constant 0 : i32
    return %c0_i32, %c0_i32_0 : i32, i32
  }
  func.func @transform_6(%arg0: i32) -> (i32, i32) {
    %c0_i32 = arith.constant 0 : i32
    %c0_i32_0 = arith.constant 0 : i32
    %c0_i32_1 = arith.constant 0 : i32
    return %c0_i32, %c0_i32_0 : i32, i32
  }
  func.func @transform_7(%arg0: i32) -> (i32, i32, i32) {
    %c0_i32 = arith.constant 0 : i32
    %c0_i32_0 = arith.constant 0 : i32
    %c0_i32_1 = arith.constant 0 : i32
    %c0_i32_2 = arith.constant 0 : i32
    return %c0_i32, %c0_i32_0, %c0_i32_1 : i32, i32, i32
  }
  func.func @transform_8(%arg0: i32) -> (i32, i32, i32) {
    %c0_i32 = arith.constant 0 : i32
    %c0_i32_0 = arith.constant 0 : i32
    %c0_i32_1 = arith.constant 0 : i32
    %c0_i32_2 = arith.constant 0 : i32
    return %c0_i32, %c0_i32_0, %c0_i32_1 : i32, i32, i32
  }
  func.func @transform_9(%arg0: i32) -> (i32, i32, i32) {
    %c0_i32 = arith.constant 0 : i32
    %c0_i32_0 = arith.constant 0 : i32
    %c0_i32_1 = arith.constant 0 : i32
    %c0_i32_2 = arith.constant 0 : i32
    return %c0_i32, %c0_i32_0, %c0_i32_1 : i32, i32, i32
  }
  func.func @transform_10(%arg0: i32) -> (i32, i32, i32) {
    %c0_i32 = arith.constant 0 : i32
    %c0_i32_0 = arith.constant 0 : i32
    %c0_i32_1 = arith.constant 0 : i32
    %c0_i32_2 = arith.constant 0 : i32
    return %c0_i32, %c0_i32_0, %c0_i32_1 : i32, i32, i32
  }
  func.func @transform_11(%arg0: i32) -> (i32, i32, i32) {
    %c0_i32 = arith.constant 0 : i32
    %c0_i32_0 = arith.constant 0 : i32
    %c0_i32_1 = arith.constant 0 : i32
    %c0_i32_2 = arith.constant 0 : i32
    return %c0_i32, %c0_i32_0, %c0_i32_1 : i32, i32, i32
  }
  func.func @transform_12(%arg0: i32) -> (i32, i32, i32) {
    %c0_i32 = arith.constant 0 : i32
    %c0_i32_0 = arith.constant 0 : i32
    %c0_i32_1 = arith.constant 0 : i32
    %c0_i32_2 = arith.constant 0 : i32
    return %c0_i32, %c0_i32_0, %c0_i32_1 : i32, i32, i32
  }
  func.func @transform_13(%arg0: i32) -> (i32, i32, i32) {
    %c0_i32 = arith.constant 0 : i32
    %c0_i32_0 = arith.constant 0 : i32
    %c0_i32_1 = arith.constant 0 : i32
    %c0_i32_2 = arith.constant 0 : i32
    return %c0_i32, %c0_i32_0, %c0_i32_1 : i32, i32, i32
  }
  func.func @transform_14(%arg0: i32) -> (i32, i32, i32) {
    %c0_i32 = arith.constant 0 : i32
    %c0_i32_0 = arith.constant 0 : i32
    %c0_i32_1 = arith.constant 0 : i32
    %c0_i32_2 = arith.constant 0 : i32
    return %c0_i32, %c0_i32_0, %c0_i32_1 : i32, i32, i32
  }
  func.func @transform_15(%arg0: i32) -> (i32, i32, i32) {
    %c0_i32 = arith.constant 0 : i32
    %c0_i32_0 = arith.constant 0 : i32
    %c0_i32_1 = arith.constant 0 : i32
    %c0_i32_2 = arith.constant 0 : i32
    return %c0_i32, %c0_i32_0, %c0_i32_1 : i32, i32, i32
  }
  func.func @transform_16(%arg0: i32) -> (i32, i32, i32) {
    %c0_i32 = arith.constant 0 : i32
    %c0_i32_0 = arith.constant 0 : i32
    %c0_i32_1 = arith.constant 0 : i32
    %c0_i32_2 = arith.constant 0 : i32
    return %c0_i32, %c0_i32_0, %c0_i32_1 : i32, i32, i32
  }
  func.func @transform_17(%arg0: i32) -> (i32, i32, i32) {
    %c0_i32 = arith.constant 0 : i32
    %c0_i32_0 = arith.constant 0 : i32
    %c0_i32_1 = arith.constant 0 : i32
    %c0_i32_2 = arith.constant 0 : i32
    return %c0_i32, %c0_i32_0, %c0_i32_1 : i32, i32, i32
  }
  func.func @transform_18(%arg0: i32) -> (i32, i32, i32) {
    %c0_i32 = arith.constant 0 : i32
    %c0_i32_0 = arith.constant 0 : i32
    %c0_i32_1 = arith.constant 0 : i32
    %c0_i32_2 = arith.constant 0 : i32
    return %c0_i32, %c0_i32_0, %c0_i32_1 : i32, i32, i32
  }
  func.func @transform_19(%arg0: i32) -> (i32, i32) {
    %c0_i32 = arith.constant 0 : i32
    %c0_i32_0 = arith.constant 0 : i32
    %c0_i32_1 = arith.constant 0 : i32
    return %c0_i32, %c0_i32_0 : i32, i32
  }
  func.func @transform_20(%arg0: i32) -> (i32, i32) {
    %c0_i32 = arith.constant 0 : i32
    %c0_i32_0 = arith.constant 0 : i32
    %c0_i32_1 = arith.constant 0 : i32
    return %c0_i32, %c0_i32_0 : i32, i32
  }
  func.func @transform_21(%arg0: i32) -> (i32, i32) {
    %c0_i32 = arith.constant 0 : i32
    %c0_i32_0 = arith.constant 0 : i32
    %c0_i32_1 = arith.constant 0 : i32
    return %c0_i32, %c0_i32_0 : i32, i32
  }
  func.func @transform_22(%arg0: i32) -> (i32, i32, i32) {
    %c0_i32 = arith.constant 0 : i32
    %c0_i32_0 = arith.constant 0 : i32
    %c0_i32_1 = arith.constant 0 : i32
    return %arg0, %c0_i32, %c0_i32_0 : i32, i32, i32
  }
}

</mosaic_0001>

<bundles_post_ra>
// kernel: encode_image.1
= control target key start
LH: loop header
LB: loop body
LE: loop exit
PB: predicated region body
PF: predicated region fallthrough
CT: control target
= control target key end

     0   :  { %s3685_s0 = inlined_call_operand.vmem [shape: f32[1,8,192], index: 0, kind: input, shape index: {}]   ;;  %s3686_s1 = inlined_call_operand.vmem [shape: f32[40,40], index: 1, kind: input, shape index: {}]   ;;  %s3687_s2 = inlined_call_operand.vmem [shape: f32[192,32], index: 2, kind: input, shape index: {}]   ;;  %s3688_s3 = inlined_call_operand.vmem [shape: f32[1,32], index: 3, kind: input, shape index: {}]   ;;  %s3689_s4 = inlined_call_operand.vmem [shape: f32[8,32], index: 4, kind: input, shape index: {}]   ;;  %s3690_s5 = inlined_call_operand.vmem [shape: f32[1,32], index: 5, kind: input, shape index: {}]   ;;  %s3691_s6 = inlined_call_operand.vmem [shape: f32[1,32], index: 6, kind: input, shape index: {}]   ;;  %s3692_s7 = inlined_call_operand.vmem [shape: f32[2,1,32], index: 7, kind: input, shape index: {}]   ;;  %s3693_s8 = inlined_call_operand.vmem [shape: f32[2,1,32], index: 8, kind: input, shape index: {}]   ;;  %s3694_s9 = inlined_call_operand.vmem [shape: f32[2,32,96], index: 9, kind: input, shape index: {}]   ;;  %s3695_s10 = inlined_call_operand.vmem [shape: f32[2,1,96], index: 10, kind: input, shape index: {}]   ;;  %s3696_s11 = inlined_call_operand.vmem [shape: f32[2,32,32], index: 11, kind: input, shape index: {}]   ;;  %s3697_s12 = inlined_call_operand.vmem [shape: f32[2,1,32], index: 12, kind: input, shape index: {}]   ;;  %s3698_s13 = inlined_call_operand.vmem [shape: f32[2,1,32], index: 13, kind: input, shape index: {}]   ;;  %s3699_s14 = inlined_call_operand.vmem [shape: f32[2,1,32], index: 14, kind: input, shape index: {}]   ;;  %s3700_s15 = inlined_call_operand.vmem [shape: f32[2,32,128], index: 15, kind: input, shape index: {}]   ;;  %s3701_s16 = inlined_call_operand.vmem [shape: f32[2,1,128], index: 16, kind: input, shape index: {}]   ;;  %s3702_s17 = inlined_call_operand.vmem [shape: f32[2,128,32], index: 17, kind: input, shape index: {}]   ;;  %s3703_s18 = inlined_call_operand.vmem [shape: f32[2,1,32], index: 18, kind: input, shape index: {}]   ;;  %s3704_s19 = inlined_call_operand.vmem [shape: f32[1,32], index: 19, kind: input, shape index: {}]   ;;  %s3705_s20 = inlined_call_operand.vmem [shape: f32[1,32], index: 20, kind: input, shape index: {}]   ;;  %s3706_s21 = inlined_call_operand.vmem [shape: f32[32,16], index: 21, kind: input, shape index: {}]   ;;  %s3707_s22 = inlined_call_operand.hbm [shape: f32[1,2,16], index: 22, kind: output, shape index: {}]  }
   0x1   :  { %3713 = sst [smem:[#allocation5_spill]] %s3685_s0 }
   0x2   :  { %3714 = sst [smem:[#allocation6_spill]] %s3686_s1 }
   0x3   :  { %3715 = sst [smem:[#allocation7_spill]] %s3687_s2 }
   0x4   :  { %3716 = sst [smem:[#allocation8_spill]] %s3688_s3 }
   0x5   :  { %3717 = sst [smem:[#allocation9_spill]] %s3689_s4 }
   0x6   :  { %3718 = sst [smem:[#allocation10_spill]] %s3690_s5 }
   0x7   :  { %3719 = sst [smem:[#allocation11_spill]] %s3691_s6 }
   0x8   :  { %s3720_s29 = sld [smem:[#allocation7_spill]]  ;;  %v2900_v3 = vmov 0.0|0.0   ;;  %vm99_vm0 = vcmask 523264   ;;  %s3721_s0 = sld [smem:[#allocation5_spill]] }
   0x9   :  { %2564 = vmatprep.subr.bf16.mxu0 %v2900_v3 }
   0xe   :  { %v74_v0 = vld [vmem:[%s3720_s29] sm:$0xff]  ;;  %v75_v1 = vld [vmem:[%s3720_s29 + $0x8] sm:$0xff]  ;;  %v76_v2 = vld [vmem:[%s3720_s29 + $0x10] sm:$0xff] }
   0xf   :  { %v2565_v4 = vpack.c.bf16 %v75_v1, %v74_v0  ;;  %v77_v5 = vld [vmem:[%s3720_s29 + $0x18] sm:$0xff]  ;;  %v78_v7 = vld [vmem:[%s3720_s29 + $0x20] sm:$0xff]  ;;  %v79_v8 = vld [vmem:[%s3720_s29 + $0x28] sm:$0xff] }
  0x10   :  { %v2568_v6 = vpack.c.bf16 %v77_v5, %v76_v2  ;;  %v2571_v9 = vpack.c.bf16 %v79_v8, %v78_v7  ;;  %v80_v10 = vld [vmem:[%s3720_s29 + $0x30] sm:$0xff]  ;;  %v81_v11 = vld [vmem:[%s3720_s29 + $0x38] sm:$0xff]  ;;  %v73_v12 = vld [vmem:[%s3721_s0 + $0x8] sm:$0xff] }
  0x11   :  { %2566 = vmatpush1.bf16.msra.mxu0 %v2565_v4  ;;  %2095 = vmatprep.mubr.msk.f32.mxu0 %vm99_vm0, %v73_v12 }
  0x12   :  { %2567 = vmatprep.subr.bf16.mxu0 %v2900_v3 }
  0x15   :  { %2569 = vmatpush1.bf16.msra.mxu0 %v2568_v6 }
  0x16   :  { %2570 = vmatprep.subr.bf16.mxu0 %v2900_v3 }
  0x17   :  { %27 = vsyncpa [#allocation3], 0  ;;  %v2574_v13 = vpack.c.bf16 %v81_v11, %v80_v10  ;;  %v82_v14 = vld [vmem:[%s3720_s29 + $0x40] sm:$0xff]  ;;  %v83_v15 = vld [vmem:[%s3720_s29 + $0x48] sm:$0xff]  ;;  %s3722_s28 = sld [smem:[#allocation9_spill]]  ;;  %vm183_vm1 = vcmask 1041408  }
  0x18   :  { %v2577_v16 = vpack.c.bf16 %v83_v15, %v82_v14  ;;  %v84_v17 = vld [vmem:[%s3720_s29 + $0x50] sm:$0xff]  ;;  %v85_v18 = vld [vmem:[%s3720_s29 + $0x58] sm:$0xff]  ;;  %v86_v20 = vld [vmem:[%s3720_s29 + $0x60] sm:$0xff]  ;;  %vm187_vm2 = vcmask 261120   ;;  %vm191_vm3 = vcmask 254976   ;;  %s3724_s1 = sld [smem:[#allocation10_spill]] }
  0x19   :  { %2572 = vmatpush1.bf16.msra.mxu0 %v2571_v9  ;;  %v2580_v19 = vpack.c.bf16 %v85_v18, %v84_v17  ;;  %v87_v21 = vld [vmem:[%s3720_s29 + $0x68] sm:$0xff]  ;;  %v88_v23 = vld [vmem:[%s3720_s29 + $0x70] sm:$0xff]  ;;  %v89_v24 = vld [vmem:[%s3720_s29 + $0x78] sm:$0xff]  ;;  %s3725_s6 = sld [smem:[#allocation11_spill]]  ;;  %s2902_s25 = smov 120   ;;  %vm384_vm4 = vcmask 1043456  }
  0x1a   :  { %2573 = vmatprep.subr.bf16.mxu0 %v2900_v3  ;;  %v2583_v22 = vpack.c.bf16 %v87_v21, %v86_v20  ;;  %v2586_v25 = vpack.c.bf16 %v89_v24, %v88_v23  ;;  %v90_v26 = vld [vmem:[%s3720_s29 + $0x80] sm:$0xff]  ;;  %v91_v27 = vld [vmem:[%s3720_s29 + $0x88] sm:$0xff]  ;;  %v92_v29 = vld [vmem:[%s3720_s29 + $0x90] sm:$0xff]  ;;  %s2903_s26 = smov 104   ;;  %vm394_vm5 = vcmask 1045504   ;;  %s2904_s2 = smov 96  }
  0x1b   :  { %v2589_v28 = vpack.c.bf16 %v91_v27, %v90_v26  ;;  %v93_v30 = vld [vmem:[%s3720_s29 + $0x98] sm:$0xff]  ;;  %v94_v32 = vld [vmem:[%s3720_s29 + $0xa0] sm:$0xff]  ;;  %v95_v33 = vld [vmem:[%s3720_s29 + $0xa8] sm:$0xff]  ;;  %vm2905_vm6 = vmmov 0   ;;  %vm419_vm7 = vcmask 64512   ;;  %vm540_vm9 = vcmask 326656  }
  0x1c   :  { %v2592_v31 = vpack.c.bf16 %v93_v30, %v92_v29  ;;  %v2595_v34 = vpack.c.bf16 %v95_v33, %v94_v32  ;;  %v96_v35 = vld [vmem:[%s3720_s29 + $0xb0] sm:$0xff]  ;;  %v97_v36 = vld [vmem:[%s3720_s29 + $0xb8] sm:$0xff]  ;;  %v72_v38 = vld [vmem:[%s3721_s0] sm:$0xff]  ;;  %s3723_s29 = sld [smem:[#allocation8_spill]]  ;;  %s2907_s27 = smov 64   ;;  %vm749_vm10 = vcmask 130048  }
  0x1d   :  { %2575 = vmatpush1.bf16.msra.mxu0 %v2574_v13  ;;  %v2598_v37 = vpack.c.bf16 %v97_v36, %v96_v35  ;;  %v98_v39 = vld [vmem:[%s3722_s28] sm:$0xff]  ;;  %v282_v24 = vld [vmem:[%s3694_s9 + $0x8] sm:$0xff]  ;;  %v284_v27 = vld [vmem:[%s3694_s9 + $0x18] sm:$0xff]  ;;  %s3728_s28 = sld [smem:[#allocation6_spill]]  ;;  %s2908_s5 = smov 8   ;;  %vm752_vm11 = vcmask 195584  }
  0x1e   :  { %2576 = vmatprep.subr.bf16.mxu0 %v2900_v3  ;;  %v2097_v1 = vld [vmem:[%s3724_s1] ss:$0 sm:$0xff]  ;;  %vm3198_vm8 = vmpackc.low %vm419_vm7, %vm419_vm7  ;;  %s2909_s24 = smov 16   ;;  %s3711_s3 = smov 24   ;;  %vm2079_vm12 = vcmask 123904  }
  0x1f   :  { %v2098_v4 = vld [vmem:[%s3725_s6] ss:$0 sm:$0xff]  ;;  %s2901_s6 = smov 112  }
  0x20   :  { %v281_v23 = vld [vmem:[%s3694_s9] sm:$0xff] }
  0x21   :  { %2578 = vmatpush1.bf16.msra.mxu0 %v2577_v16  ;;  %v2600_v26 = vpack.c.bf16 %v282_v24, %v281_v23  ;;  %v2099_v36 = vld [vmem:[%s3692_s7] ss:$0 sm:$0xff] }
  0x22   :  { %2579 = vmatprep.subr.bf16.mxu0 %v2900_v3  ;;  %v2096_v43 = vld [vmem:[%s3723_s29] ss:$0 sm:$0xff] }
  0x23   :  { %2601 = vmatprep.subr.bf16.mxu1 %v2600_v26 }
  0x24   :  { %2603 = vmatpush3.bf16.msra.mxu1 %v2600_v26  ;;  %v3235_v26 = vld [vmem:[%s3728_s28 + $0x8] sm:$0xff] }
  0x25   :  { %2581 = vmatpush1.bf16.msra.mxu0 %v2580_v19 }
  0x26   :  { %2582 = vmatprep.subr.bf16.mxu0 %v2900_v3 }
  0x29   :  { %2584 = vmatpush1.bf16.msra.mxu0 %v2583_v22 }
  0x2a   :  { %2585 = vmatprep.subr.bf16.mxu0 %v2900_v3 }
  0x2d   :  { %2587 = vmatpush1.bf16.msra.mxu0 %v2586_v25  ;;  %v283_v25 = vld [vmem:[%s3694_s9 + $0x10] sm:$0xff] }
  0x2e   :  { %2588 = vmatprep.subr.bf16.mxu0 %v2900_v3 }
  0x31   :  { %2590 = vmatpush1.bf16.msra.mxu0 %v2589_v28  ;;  %v2604_v28 = vpack.c.bf16 %v284_v27, %v283_v25 }
  0x32   :  { %2591 = vmatprep.subr.bf16.mxu0 %v2900_v3 }
  0x33   :  { %2605 = vmatprep.subr.bf16.mxu1 %v2604_v28 }
  0x34   :  { %2607 = vmatpush3.bf16.msra.mxu1 %v2604_v28 }
  0x35   :  { %2593 = vmatpush1.bf16.msra.mxu0 %v2592_v31  ;;  %2608 = vmatprep.subr.bf16.mxu1 %v2900_v3 }
  0x36   :  { %2594 = vmatprep.subr.bf16.mxu0 %v2900_v3 }
  0x39   :  { %2596 = vmatpush1.bf16.msra.mxu0 %v2595_v34 }
  0x3a   :  { %2597 = vmatprep.subr.bf16.mxu0 %v2900_v3 }
  0x3d   :  { %2599 = vmatpush1.bf16.msra.mxu0 %v2598_v37 }
  0x40   :  { %168 = vmatmul.mubr.f32.vlgmr.msra.gmra.mrb[0].mxu0 %v72_v38  ;;  %v2100_v38 = vld [vmem:[%s3693_s8] ss:$0 sm:$0xff] }
 0x113   :  { %v169_v40 = vpop.f32.mrb[0].mxu0 }
 0x114   :  { %v170_v41 = vadd.f32 %v169_v40, %v98_v39  ;;  %v171_v42 = vpop.f32.mrb[1].mxu0 }
 0x116   :  { %v181_v44 = vrot.slane %v170_v41, 6 }
 0x118   :  { %v184_v45 = vsel %vm183_vm1, %v2096_v43, %v181_v44  ;;  %v192_v47 = vsel %vm191_vm3, %v181_v44, 0.0 }
 0x119   :  { %v188_v46 = vsel %vm187_vm2, %v184_v45, 0.0 }
 0x11a   :  { %189 = vadd.xlane.f32.xlu0 %v188_v46 }
 0x11e   :  { %193 = vadd.xlane.f32.xlu0 %v192_v47 }
 0x1a7   :  { %v190_v48 = vpop.xlane.xlu0 %189 }
 0x1a8   :  { %v196_v49 = vmul.f32 0.03125, %v190_v48 }
 0x1aa   :  { %v198_v50 = vsub.f32 %v184_v45, %v196_v49  ;;  %v2101_v45 = vld [vmem:[%s3695_s10] ss:$0 sm:$0xff] }
 0x1ab   :  { %v194_v51 = vpop.xlane.xlu0 %193 }
 0x1ac   :  { %v197_v52 = vmul.f32 0.03125, %v194_v51  ;;  %v200_v53 = vmul.f32 %v198_v50, %v198_v50 }
 0x1ae   :  { %v199_v54 = vsub.f32 %v181_v44, %v197_v52  ;;  %v202_v55 = vsel %vm187_vm2, %v200_v53, 0.0 }
 0x1af   :  { %203 = vadd.xlane.f32.xlu1 %v202_v55 }
 0x1b0   :  { %v201_v56 = vmul.f32 %v199_v54, %v199_v54 }
 0x1b2   :  { %v205_v57 = vsel %vm191_vm3, %v201_v56, 0.0 }
 0x1b3   :  { %206 = vadd.xlane.f32.xlu1 %v205_v57 }
 0x23c   :  { %v204_v58 = vpop.xlane.xlu1 %203 }
 0x23d   :  { %v208_v59 = vmul.f32 0.03125, %v204_v58 }
 0x23f   :  { %v210_v60 = vadd.f32 1e-05, %v208_v59 }
 0x240   :  { %v207_v61 = vpop.xlane.xlu1 %206 }
 0x241   :  { %2798 = vrsqrt.f32 %v210_v60  ;;  %v209_v62 = vmul.f32 0.03125, %v207_v61 }
 0x243   :  { %v211_v63 = vadd.f32 1e-05, %v209_v62 }
 0x245   :  { %2800 = vrsqrt.f32 %v211_v63 }
 0x24b   :  { %v2799_v0 = vpop.eup %2798 }
 0x24c   :  { %v214_v2 = vmul.f32 %v2799_v0, %v198_v50 }
 0x24e   :  { %v222_v5 = vmul.f32 %v2097_v1, %v214_v2 }
 0x24f   :  { %v2801_v6 = vpop.eup %2800 }
 0x250   :  { %v3134_v7 = vadd.f32 %v2098_v4, %v222_v5  ;;  %v215_v8 = vmul.f32 %v2801_v6, %v199_v54 }
 0x252   :  { %v239_v9 = vsel %vm187_vm2, %v3134_v7, 0.0  ;;  %v223_v10 = vmul.f32 %v2097_v1, %v215_v8  ;;  %v2906_v8 = vmov 0.0  }
 0x253   :  { %240 = vadd.xlane.f32.xlu0 %v239_v9 }
 0x254   :  { %v3138_v11 = vadd.f32 %v2098_v4, %v223_v10 }
 0x256   :  { %v242_v12 = vsel %vm191_vm3, %v3138_v11, 0.0 }
 0x257   :  { %243 = vadd.xlane.f32.xlu1 %v242_v12 }
 0x2e0   :  { %v241_v13 = vpop.xlane.xlu0 %240 }
 0x2e1   :  { %v245_v14 = vmul.f32 0.03125, %v241_v13 }
 0x2e3   :  { %v247_v15 = vsub.f32 %v3134_v7, %v245_v14 }
 0x2e4   :  { %v244_v16 = vpop.xlane.xlu1 %243 }
 0x2e5   :  { %v246_v17 = vmul.f32 0.03125, %v244_v16  ;;  %v249_v18 = vmul.f32 %v247_v15, %v247_v15 }
 0x2e7   :  { %v248_v19 = vsub.f32 %v3138_v11, %v246_v17  ;;  %v251_v20 = vsel %vm187_vm2, %v249_v18, 0.0 }
 0x2e8   :  { %252 = vadd.xlane.f32.xlu0 %v251_v20 }
 0x2e9   :  { %v250_v21 = vmul.f32 %v248_v19, %v248_v19 }
 0x2eb   :  { %v254_v22 = vsel %vm191_vm3, %v250_v21, 0.0  ;;  %v3229_v21 = vld [vmem:[%s3728_s28] sm:$0xff] }
 0x2ec   :  { %255 = vadd.xlane.f32.xlu1 %v254_v22 }
 0x375   :  { %v253_v29 = vpop.xlane.xlu0 %252 }
 0x376   :  { %v257_v30 = vmul.f32 0.03125, %v253_v29 }
 0x378   :  { %v259_v31 = vadd.f32 1e-05, %v257_v30 }
 0x379   :  { %v256_v32 = vpop.xlane.xlu1 %255 }
 0x37a   :  { %2802 = vrsqrt.f32 %v259_v31  ;;  %v258_v33 = vmul.f32 0.03125, %v256_v32  ;;  %v3242_v32 = vld [vmem:[%s3728_s28 + $0x10] sm:$0xff] }
 0x37c   :  { %v260_v34 = vadd.f32 1e-05, %v258_v33 }
 0x37e   :  { %2804 = vrsqrt.f32 %v260_v34 }
 0x384   :  { %v2803_v35 = vpop.eup %2802 }
 0x385   :  { %v263_v37 = vmul.f32 %v2803_v35, %v247_v15 }
 0x387   :  { %v271_v39 = vmul.f32 %v2099_v36, %v263_v37 }
 0x388   :  { %v2805_v40 = vpop.eup %2804 }
 0x389   :  { %v264_v41 = vmul.f32 %v2805_v40, %v248_v19  ;;  %v279_v42 = vadd.f32 %v2100_v38, %v271_v39 }
 0x38b   :  { %v272_v43 = vmul.f32 %v2099_v36, %v264_v41  ;;  %2325 = vmatprep.mubr.msk.f32.mxu1 %vm187_vm2, %v279_v42 }
 0x38d   :  { %v280_v44 = vadd.f32 %v2100_v38, %v272_v43  ;;  %v3249_v38 = vld [vmem:[%s3728_s28 + $0x18] sm:$0xff] }
 0x38f   :  { %2326 = vmatmul.mubr.msk.f32.vlgmr.msra.gmra.mrb[0].mxu1 %vm187_vm2, %v280_v44  ;;  %v3256_v44 = vld [vmem:[%s3728_s28 + $0x20] sm:$0xff] }
 0x390   :  { %2338 = vmatprep.mubr.msk.f32.mxu1 %vm2905_vm6, %v2906_v8 }
 0x462   :  { %v2327_v46 = vpop.f32.mrb[0].mxu1 }
 0x463   :  { %v370_v47 = vadd.f32 %v2327_v46, %v2101_v45  ;;  %v364_v48 = vpop.f32.mrb[1].mxu1 }
 0x464   :  { %v365_v49 = vadd.f32 %v2101_v45, %v364_v48 }
 0x465   :  { %v376_v52 = vrot.slane %v370_v47, 6  ;;  %v386_v55 = vrot.slane %v370_v47, 4  ;;  %v396_v57 = vrot.slane %v370_v47, 2 }
 0x466   :  { %v385_v50 = vrot.slane %v365_v49, 4  ;;  %v375_v51 = vrot.slane %v365_v49, 6  ;;  %v395_v53 = vrot.slane %v365_v49, 2 }
 0x468   :  { %388 = vrot.lane.b32.xlu1 %v385_v50, %s2901_s6  ;;  %378 = vrot.lane.b32.xlu0 %v375_v51, %s2902_s25  ;;  %v377_v54 = vsel %vm183_vm1, %v375_v51, %v376_v52  ;;  %v387_v56 = vsel %vm384_vm4, %v385_v50, %v386_v55  ;;  %v397_v58 = vsel %vm394_vm5, %v395_v53, %v396_v57 }
 0x46c   :  { %398 = vrot.lane.b32.xlu0 %v395_v53, %s2903_s26  ;;  %380 = vrot.lane.b32.xlu1 %v377_v54, %s2902_s25 }
 0x470   :  { %390 = vrot.lane.b32.xlu1 %v387_v56, %s2901_s6 }
 0x474   :  { %400 = vrot.lane.b32.xlu1 %v397_v58, %s2903_s26 }
 0x4da   :  { %v389_v59 = vpop.permute.xlu1 %388  ;;  %v379_v60 = vpop.permute.xlu0 %378 }
 0x4db   :  { %v403_v61 = vsel %vm183_vm1, %v370_v47, %v379_v60 }
 0x4dc   :  { %v3180_v62 = vpack.i.bf16 %v403_v61, %v365_v49 }
 0x4de   :  { %2759 = vrot.lane.b32.xlu0 %v3180_v62, %s2904_s2  ;;  %v381_v63 = vpop.permute.xlu1 %380  ;;  %v399_v0 = vpop.permute.xlu0 %398 }
 0x4df   :  { %v404_v2 = vsel %vm384_vm4, %v381_v63, %v389_v59 }
 0x4e2   :  { %v391_v1 = vpop.permute.xlu1 %390 }
 0x4e3   :  { %v405_v4 = vsel %vm394_vm5, %v391_v1, %v399_v0 }
 0x4e4   :  { %v3186_v5 = vpack.i.bf16 %v405_v4, %v404_v2 }
 0x4e6   :  { %2764 = vrot.lane.b32.xlu1 %v3186_v5, %s2904_s2  ;;  %v3190_v6 = vpop.permute.xlu1 %400 }
 0x4e7   :  { %417 = vrot.lane.b32.xlu0 %v3190_v6, %s2904_s2 }
 0x550   :  { %v2760_v9 = vpop.permute.xlu0 %2759 }
 0x551   :  { %v2762_v10 = vunpack.i.h.bf16 %v2760_v9  ;;  %v2761_v12 = vunpack.i.l.bf16 %v2760_v9 }
 0x553   :  { %v2609_v14 = vpack.c.bf16 %v2762_v10, %v2761_v12 }
 0x555   :  { %2611 = vmatpush3.bf16.xpose.msk.msra.mxu1 %vm3198_vm8, %v2609_v14 }
 0x556   :  { %2612 = vmatprep.subr.bf16.mxu1 %v2900_v3 }
 0x558   :  { %v2765_v15 = vpop.permute.xlu1 %2764 }
 0x559   :  { %v2767_v16 = vunpack.i.h.bf16 %v2765_v15  ;;  %v2766_v17 = vunpack.i.l.bf16 %v2765_v15  ;;  %v418_v19 = vpop.permute.xlu0 %417 }
 0x55b   :  { %v2613_v18 = vpack.c.bf16 %v2767_v16, %v2766_v17 }
 0x55d   :  { %2615 = vmatpush3.bf16.xpose.msk.msra.mxu1 %vm3198_vm8, %v2613_v18 }
 0x55e   :  { %2336 = vmatprep.subr.mxu1 %v2906_v8 }
 0x565   :  { %2337 = vmatpush3.xpose.msk.msra.mxu1 %vm419_vm7, %v418_v19 }
 0x566   :  { %2616 = vmatprep.subr.bf16.mxu1 %v2900_v3 }
 0x568   :  { %2339 = vmatmul.mubr.msk.f32.vlgmr.msra.gmra.mrb[2].mxu1 %vm419_vm7, %v365_v49 }
 0x569   :  { %2341 = vmatprep.mubr.msk.f32.mxu1 %vm2905_vm6, %v2906_v8 }
 0x56c   :  { %2342 = vmatmul.mubr.msk.f32.gmra.mrb[4].mxu1 %vm419_vm7, %v403_v61 }
 0x56d   :  { %2344 = vmatprep.mubr.msk.f32.mxu1 %vm2905_vm6, %v2906_v8 }
 0x570   :  { %2345 = vmatmul.mubr.msk.f32.gmra.mrb[6].mxu1 %vm419_vm7, %v404_v2 }
 0x571   :  { %2347 = vmatprep.mubr.msk.f32.mxu1 %vm2905_vm6, %v2906_v8 }
 0x574   :  { %2348 = vmatmul.mubr.msk.f32.gmra.mrb[8].mxu1 %vm419_vm7, %v405_v4 }
 0x575   :  { %2350 = vmatprep.mubr.msk.f32.mxu1 %vm2905_vm6, %v2906_v8 }
 0x578   :  { %2351 = vmatmul.mubr.msk.f32.gmra.mrb[10].mxu1 %vm419_vm7, %v3190_v6 }
 0x579   :  { %2363 = vmatprep.mubr.msk.f32.mxu1 %vm2905_vm6, %v2906_v8 }
 0x63b   :  { %v506_v20 = vpop.f32.mrb[2].mxu1 }
 0x63c   :  { %v530_v22 = vmul.f32 0.35355338, %v506_v20  ;;  %v2340_v23 = vpop.f32.mrb[3].mxu1 }
 0x63e   :  { %v535_v24 = vadd.f32 %v530_v22, %v3229_v21 }
 0x63f   :  { %v511_v25 = vpop.f32.mrb[4].mxu1 }
 0x640   :  { %v531_v27 = vmul.f32 0.35355338, %v511_v25  ;;  %v2343_v28 = vpop.f32.mrb[5].mxu1  ;;  %v541_v29 = vsel %vm540_vm9, %v535_v24, -inf }
 0x641   :  { %542 = vmax.xlane.f32.xlu1 %v541_v29 }
 0x642   :  { %v536_v30 = vadd.f32 %v531_v27, %v3235_v26 }
 0x643   :  { %v516_v31 = vpop.f32.mrb[6].mxu1 }
 0x644   :  { %v532_v33 = vmul.f32 0.35355338, %v516_v31  ;;  %v2346_v34 = vpop.f32.mrb[7].mxu1  ;;  %v544_v35 = vsel %vm540_vm9, %v536_v30, -inf }
 0x645   :  { %545 = vmax.xlane.f32.xlu0 %v544_v35 }
 0x646   :  { %v537_v36 = vadd.f32 %v532_v33, %v3242_v32 }
 0x647   :  { %v521_v37 = vpop.f32.mrb[8].mxu1 }
 0x648   :  { %v533_v39 = vmul.f32 0.35355338, %v521_v37  ;;  %v2349_v40 = vpop.f32.mrb[9].mxu1  ;;  %v547_v41 = vsel %vm540_vm9, %v537_v36, -inf }
 0x649   :  { %548 = vmax.xlane.f32.xlu0 %v547_v41 }
 0x64a   :  { %v538_v42 = vadd.f32 %v533_v39, %v3249_v38 }
 0x64b   :  { %v526_v43 = vpop.f32.mrb[10].mxu1 }
 0x64c   :  { %v534_v45 = vmul.f32 0.35355338, %v526_v43  ;;  %v2352_v46 = vpop.f32.mrb[11].mxu1  ;;  %v550_v47 = vsel %vm540_vm9, %v538_v42, -inf }
 0x64d   :  { %551 = vmax.xlane.f32.xlu0 %v550_v47  ;;  %v755_v46 = vld [vmem:[%s3696_s11] sm:$0xff]  ;;  %v756_v47 = vld [vmem:[%s3696_s11 + $0x8] sm:$0xff] }
 0x64e   :  { %v539_v48 = vadd.f32 %v534_v45, %v3256_v44 }
 0x650   :  { %v553_v49 = vsel %vm540_vm9, %v539_v48, -inf }
 0x651   :  { %554 = vmax.xlane.f32.xlu1 %v553_v49  ;;  %v2622_v49 = vpack.c.bf16 %v756_v47, %v755_v46  ;;  %v896_v46 = vld [vmem:[%s3700_s15 + $0x8] sm:$0xff] }
 0x653   :  { %2623 = vmatprep.subr.bf16.mxu0 %v2622_v49 }
 0x654   :  { %2625 = vmatpush3.bf16.msra.mxu0 %v2622_v49  ;;  %v898_v49 = vld [vmem:[%s3700_s15 + $0x18] sm:$0xff] }
 0x662   :  { %2769 = vrot.lane.b32.xlu1 %v3180_v62, %s2907_s27 }
 0x6ce   :  { %v543_v50 = vpop.xlane.xlu1 %542 }
 0x6cf   :  { %v556_v51 = vsub.f32 %v535_v24, %v543_v50 }
 0x6d1   :  { %v561_v52 = vmul.f32 1.442695, %v556_v51  ;;  %v757_v51 = vld [vmem:[%s3696_s11 + $0x10] sm:$0xff] }
 0x6d2   :  { %v546_v53 = vpop.xlane.xlu0 %545 }
 0x6d3   :  { %2806 = vpow2.f32 %v561_v52  ;;  %v557_v54 = vsub.f32 %v536_v30, %v546_v53  ;;  %v758_v52 = vld [vmem:[%s3696_s11 + $0x18] sm:$0xff] }
 0x6d5   :  { %v563_v55 = vmul.f32 1.442695, %v557_v54  ;;  %v2626_v54 = vpack.c.bf16 %v758_v52, %v757_v51 }
 0x6d6   :  { %v549_v56 = vpop.xlane.xlu0 %548 }
 0x6d7   :  { %2808 = vpow2.f32 %v563_v55  ;;  %v558_v57 = vsub.f32 %v537_v36, %v549_v56  ;;  %2627 = vmatprep.subr.bf16.mxu0 %v2626_v54 }
 0x6d8   :  { %2629 = vmatpush3.bf16.msra.mxu0 %v2626_v54 }
 0x6d9   :  { %v565_v58 = vmul.f32 1.442695, %v558_v57 }
 0x6da   :  { %v552_v59 = vpop.xlane.xlu0 %551 }
 0x6db   :  { %2810 = vpow2.f32 %v565_v58  ;;  %v559_v60 = vsub.f32 %v538_v42, %v552_v59 }
 0x6dd   :  { %v2807_v61 = vpop.eup %2806  ;;  %v567_v63 = vmul.f32 1.442695, %v559_v60 }
 0x6de   :  { %v555_v0 = vpop.xlane.xlu1 %554  ;;  %v571_v1 = vsel %vm540_vm9, %v2807_v61, 0.0 }
 0x6df   :  { %2812 = vpow2.f32 %v567_v63  ;;  %v560_v62 = vsub.f32 %v539_v48, %v555_v0  ;;  %572 = vadd.xlane.f32.xlu0 %v571_v1 }
 0x6e1   :  { %v2809_v2 = vpop.eup %2808  ;;  %v569_v4 = vmul.f32 1.442695, %v560_v62 }
 0x6e2   :  { %v2770_v9 = vpop.permute.xlu1 %2769  ;;  %v574_v10 = vsel %vm540_vm9, %v2809_v2, 0.0 }
 0x6e3   :  { %2814 = vpow2.f32 %v569_v4  ;;  %v2772_v12 = vunpack.i.h.bf16 %v2770_v9  ;;  %v2771_v14 = vunpack.i.l.bf16 %v2770_v9  ;;  %575 = vadd.xlane.f32.xlu1 %v574_v10 }
 0x6e5   :  { %v2811_v15 = vpop.eup %2810  ;;  %v2617_v16 = vpack.c.bf16 %v2772_v12, %v2771_v14 }
 0x6e6   :  { %v577_v17 = vsel %vm540_vm9, %v2811_v15, 0.0 }
 0x6e7   :  { %578 = vadd.xlane.f32.xlu0 %v577_v17  ;;  %2618 = vmatpush3.bf16.msra.mxu1 %v2617_v16 }
 0x6e8   :  { %2619 = vmatprep.subr.bf16.mxu1 %v2900_v3 }
 0x6e9   :  { %v2813_v18 = vpop.eup %2812 }
 0x6ea   :  { %v580_v19 = vsel %vm540_vm9, %v2813_v18, 0.0 }
 0x6eb   :  { %581 = vadd.xlane.f32.xlu1 %v580_v19 }
 0x6ed   :  { %v2815_v20 = vpop.eup %2814 }
 0x6ee   :  { %v583_v22 = vsel %vm540_vm9, %v2815_v20, 0.0 }
 0x6ef   :  { %584 = vadd.xlane.f32.xlu0 %v583_v22 }
 0x6fc   :  { %604 = vrot.lane.b32.xlu1 %v3190_v6, %s2907_s27 }
 0x705   :  { %2774 = vrot.lane.b32.xlu0 %v3186_v5, %s2907_s27 }
 0x76c   :  { %v573_v23 = vpop.xlane.xlu0 %572 }
 0x76d   :  { %2816 = vrcp.f32 %v573_v23 }
 0x770   :  { %v576_v25 = vpop.xlane.xlu1 %575 }
 0x771   :  { %2818 = vrcp.f32 %v576_v25 }
 0x774   :  { %v579_v24 = vpop.xlane.xlu0 %578 }
 0x775   :  { %2820 = vrcp.f32 %v579_v24 }
 0x777   :  { %v2817_v34 = vpop.eup %2816 }
 0x778   :  { %v582_v31 = vpop.xlane.xlu1 %581  ;;  %v591_v6 = vmul.f32 %v2817_v34, %v2807_v61 }
 0x779   :  { %2822 = vrcp.f32 %v582_v31 }
 0x77b   :  { %v2819_v5 = vpop.eup %2818 }
 0x77c   :  { %v585_v27 = vpop.xlane.xlu0 %584  ;;  %v605_v35 = vpop.permute.xlu1 %604  ;;  %v592_v36 = vmul.f32 %v2819_v5, %v2809_v2 }
 0x77d   :  { %2824 = vrcp.f32 %v585_v27 }
 0x77f   :  { %v2821_v37 = vpop.eup %2820 }
 0x780   :  { %v2775_v28 = vpop.permute.xlu0 %2774  ;;  %v593_v39 = vmul.f32 %v2821_v37, %v2811_v15 }
 0x781   :  { %v2777_v29 = vunpack.i.h.bf16 %v2775_v28  ;;  %v2776_v30 = vunpack.i.l.bf16 %v2775_v28  ;;  %v2121_v28 = vld [vmem:[%s3697_s12] ss:$0 sm:$0xff] }
 0x783   :  { %v2620_v33 = vpack.c.bf16 %v2777_v29, %v2776_v30  ;;  %v2823_v40 = vpop.eup %2822 }
 0x784   :  { %v594_v41 = vmul.f32 %v2823_v40, %v2813_v18 }
 0x785   :  { %2621 = vmatpush3.bf16.msra.mxu1 %v2620_v33 }
 0x786   :  { %2361 = vmatprep.subr.mxu1 %v2906_v8 }
 0x787   :  { %v2825_v42 = vpop.eup %2824 }
 0x788   :  { %v595_v43 = vmul.f32 %v2825_v42, %v2815_v20 }
 0x789   :  { %2362 = vmatpush3.msra.mxu1 %v605_v35 }
 0x78a   :  { %2364 = vmatmul.mubr.msk.f32.vlgmr.msra.gmra.mrb[12].mxu1 %vm540_vm9, %v591_v6 }
 0x78b   :  { %2366 = vmatprep.mubr.msk.f32.mxu1 %vm2905_vm6, %v2906_v8 }
 0x78e   :  { %2367 = vmatmul.mubr.msk.f32.gmra.mrb[14].mxu1 %vm540_vm9, %v592_v36 }
 0x78f   :  { %2369 = vmatprep.mubr.msk.f32.mxu1 %vm2905_vm6, %v2906_v8 }
 0x792   :  { %2370 = vmatmul.mubr.msk.f32.gmra.mrb[16].mxu1 %vm540_vm9, %v593_v39 }
 0x793   :  { %2372 = vmatprep.mubr.msk.f32.mxu1 %vm2905_vm6, %v2906_v8 }
 0x796   :  { %2373 = vmatmul.mubr.msk.f32.gmra.mrb[18].mxu1 %vm540_vm9, %v594_v41 }
 0x797   :  { %2375 = vmatprep.mubr.msk.f32.mxu1 %vm2905_vm6, %v2906_v8 }
 0x79a   :  { %2376 = vmatmul.mubr.msk.f32.gmra.mrb[20].mxu1 %vm540_vm9, %v595_v43 }
 0x85d   :  { %v692_v45 = vpop.f32.mrb[12].mxu1 }
 0x85e   :  { %v2365_v48 = vpop.f32.mrb[13].mxu1 }
 0x85f   :  { %v897_v48 = vld [vmem:[%s3700_s15 + $0x10] sm:$0xff] }
 0x861   :  { %v697_v50 = vpop.f32.mrb[14].mxu1 }
 0x862   :  { %v2368_v53 = vpop.f32.mrb[15].mxu1  ;;  %v718_v56 = vrot.slane %v697_v50, 2 }
 0x865   :  { %v702_v55 = vpop.f32.mrb[16].mxu1 }
 0x866   :  { %v719_v57 = vrot.slane %v702_v55, 2  ;;  %v2371_v58 = vpop.f32.mrb[17].mxu1  ;;  %v728_v61 = vrot.slane %v702_v55, 4 }
 0x867   :  { %v2122_v58 = vld [vmem:[%s3698_s13] ss:$0 sm:$0xff] }
 0x868   :  { %723 = vrot.lane.b32.xlu1 %v719_v57, %s2908_s5  ;;  %v720_v59 = vsel %vm394_vm5, %v718_v56, %v719_v57 }
 0x869   :  { %v707_v60 = vpop.f32.mrb[18].mxu1 }
 0x86a   :  { %v729_v63 = vrot.slane %v707_v60, 4  ;;  %v2374_v0 = vpop.f32.mrb[19].mxu1  ;;  %v738_v2 = vrot.slane %v707_v60, 6  ;;  %v2123_v60 = vld [vmem:[%s3699_s14] ss:$0 sm:$0xff] }
 0x86c   :  { %721 = vrot.lane.b32.xlu1 %v720_v59, %s2908_s5  ;;  %v730_v1 = vsel %vm384_vm4, %v728_v61, %v729_v63 }
 0x86d   :  { %731 = vrot.lane.b32.xlu0 %v730_v1, %s2909_s24  ;;  %v712_v62 = vpop.f32.mrb[20].mxu1 }
 0x86e   :  { %v739_v4 = vrot.slane %v712_v62, 6  ;;  %v2377_v9 = vpop.f32.mrb[21].mxu1 }
 0x86f   :  { %v1004_v9 = vld [vmem:[%s3702_s17 + $0x8] sm:$0xff] }
 0x870   :  { %733 = vrot.lane.b32.xlu1 %v729_v63, %s2909_s24  ;;  %v740_v10 = vsel %vm183_vm1, %v738_v2, %v739_v4 }
 0x871   :  { %741 = vrot.lane.b32.xlu0 %v740_v10, %s3711_s3 }
 0x874   :  { %743 = vrot.lane.b32.xlu1 %v739_v4, %s3711_s3  ;;  %v1003_v4 = vld [vmem:[%s3702_s17] sm:$0xff] }
 0x875   :  { %v2638_v10 = vpack.c.bf16 %v1004_v9, %v1003_v4 }
 0x877   :  { %2639 = vmatprep.subr.bf16.mxu1 %v2638_v10 }
 0x878   :  { %2641 = vmatpush3.bf16.msra.mxu1 %v2638_v10 }
 0x8da   :  { %v724_v12 = vpop.permute.xlu1 %723 }
 0x8db   :  { %v748_v22 = vsel %vm419_vm7, %v697_v50, %v724_v12  ;;  %v2634_v50 = vpack.c.bf16 %v898_v49, %v897_v48  ;;  %v1005_v12 = vld [vmem:[%s3702_s17 + $0x10] sm:$0xff] }
 0x8de   :  { %v722_v14 = vpop.permute.xlu1 %721 }
 0x8df   :  { %v732_v15 = vpop.permute.xlu0 %731  ;;  %v747_v16 = vsel %vm419_vm7, %v692_v45, %v722_v14  ;;  %v895_v45 = vld [vmem:[%s3700_s15] sm:$0xff]  ;;  %v1006_v14 = vld [vmem:[%s3702_s17 + $0x18] sm:$0xff] }
 0x8e0   :  { %v750_v18 = vsel %vm749_vm10, %v747_v16, %v732_v15  ;;  %v2630_v47 = vpack.c.bf16 %v896_v46, %v895_v45  ;;  %v2642_v15 = vpack.c.bf16 %v1006_v14, %v1005_v12  ;;  %v1007_v16 = vld [vmem:[%s3702_s17 + $0x20] sm:$0xff] }
 0x8e1   :  { %v2134_v14 = vld [vmem:[%s3694_s9 + $0x20] sm:$0xff] }
 0x8e2   :  { %v734_v17 = vpop.permute.xlu1 %733  ;;  %2631 = vmatprep.subr.bf16.mxu0 %v2630_v47  ;;  %2643 = vmatprep.subr.bf16.mxu1 %v2642_v15 }
 0x8e3   :  { %v742_v19 = vpop.permute.xlu0 %741  ;;  %v751_v23 = vsel %vm749_vm10, %v748_v22, %v734_v17  ;;  %2645 = vmatpush3.bf16.msra.mxu1 %v2642_v15  ;;  %v1008_v17 = vld [vmem:[%s3702_s17 + $0x28] sm:$0xff] }
 0x8e4   :  { %v753_v20 = vsel %vm752_vm11, %v750_v18, %v742_v19  ;;  %v2646_v18 = vpack.c.bf16 %v1008_v17, %v1007_v16  ;;  %v1009_v19 = vld [vmem:[%s3702_s17 + $0x30] sm:$0xff]  ;;  %v2135_v15 = vld [vmem:[%s3694_s9 + $0x28] sm:$0xff] }
 0x8e5   :  { %2386 = vmatprep.mubr.msk.f32.mxu0 %vm187_vm2, %v753_v20  ;;  %v1010_v20 = vld [vmem:[%s3702_s17 + $0x38] sm:$0xff]  ;;  %v2670_v16 = vpack.c.bf16 %v2135_v15, %v2134_v14  ;;  %v2136_v17 = vld [vmem:[%s3694_s9 + $0x30] sm:$0xff] }
 0x8e6   :  { %v744_v24 = vpop.permute.xlu1 %743  ;;  %2647 = vmatprep.subr.bf16.mxu1 %v2646_v18  ;;  %v2650_v22 = vpack.c.bf16 %v1010_v20, %v1009_v19 }
 0x8e7   :  { %v754_v25 = vsel %vm752_vm11, %v751_v23, %v744_v24  ;;  %2649 = vmatpush3.bf16.msra.mxu1 %v2646_v18  ;;  %v1011_v23 = vld [vmem:[%s3702_s17 + $0x40] sm:$0xff]  ;;  %v1012_v24 = vld [vmem:[%s3702_s17 + $0x48] sm:$0xff]  ;;  %v2137_v18 = vld [vmem:[%s3694_s9 + $0x38] sm:$0xff] }
 0x8e8   :  { %2387 = vmatmul.mubr.msk.f32.vlgmr.msra.gmra.mrb[2].mxu0 %vm187_vm2, %v754_v25  ;;  %2651 = vmatprep.subr.bf16.mxu1 %v2650_v22  ;;  %v2654_v25 = vpack.c.bf16 %v1012_v24, %v1011_v23  ;;  %v2674_v19 = vpack.c.bf16 %v2137_v18, %v2136_v17 }
 0x8e9   :  { %2633 = vmatpush3.bf16.msra.mxu0 %v2630_v47 }
 0x8ea   :  { %2635 = vmatprep.subr.bf16.mxu0 %v2634_v50 }
 0x8eb   :  { %2653 = vmatpush3.bf16.msra.mxu1 %v2650_v22 }
 0x8ec   :  { %2655 = vmatprep.subr.bf16.mxu1 %v2654_v25 }
 0x8ed   :  { %2637 = vmatpush3.bf16.msra.mxu0 %v2634_v50 }
 0x8ee   :  { %2671 = vmatprep.subr.bf16.mxu0 %v2670_v16 }
 0x8ef   :  { %2657 = vmatpush3.bf16.msra.mxu1 %v2654_v25 }
 0x9bb   :  { %v2388_v27 = vpop.f32.mrb[2].mxu0 }
 0x9bc   :  { %v841_v29 = vadd.f32 %v2388_v27, %v3138_v11  ;;  %v831_v30 = vpop.f32.mrb[3].mxu0  ;;  %v1013_v27 = vld [vmem:[%s3702_s17 + $0x50] sm:$0xff] }
 0x9bd   :  { %v840_v31 = vadd.f32 %v831_v30, %v3134_v7  ;;  %v1015_v30 = vld [vmem:[%s3702_s17 + $0x60] sm:$0xff] }
 0x9be   :  { %v3321_v33 = vadd.f32 %v2121_v28, %v841_v29 }
 0x9bf   :  { %v3323_v34 = vadd.f32 %v2121_v28, %v840_v31  ;;  %v1014_v28 = vld [vmem:[%s3702_s17 + $0x58] sm:$0xff]  ;;  %v1016_v31 = vld [vmem:[%s3702_s17 + $0x68] sm:$0xff] }
 0x9c0   :  { %v856_v6 = vsel %vm191_vm3, %v3321_v33, 0.0  ;;  %v2658_v29 = vpack.c.bf16 %v1014_v28, %v1013_v27 }
 0x9c1   :  { %857 = vadd.xlane.f32.xlu1 %v856_v6  ;;  %v853_v35 = vsel %vm187_vm2, %v3323_v34, 0.0  ;;  %v2662_v6 = vpack.c.bf16 %v1016_v31, %v1015_v30 }
 0x9c2   :  { %854 = vadd.xlane.f32.xlu0 %v853_v35  ;;  %2659 = vmatprep.subr.bf16.mxu1 %v2658_v29  ;;  %v1017_v35 = vld [vmem:[%s3702_s17 + $0x70] sm:$0xff] }
 0x9c3   :  { %2661 = vmatpush3.bf16.msra.mxu1 %v2658_v29  ;;  %v2132_v29 = vld [vmem:[%s3692_s7 + $0x1] ss:$0 sm:$0xff] }
 0x9c4   :  { %2663 = vmatprep.subr.bf16.mxu1 %v2662_v6 }
 0x9c7   :  { %2665 = vmatpush3.bf16.msra.mxu1 %v2662_v6 }
 0xa4e   :  { %v858_v5 = vpop.xlane.xlu1 %857 }
 0xa4f   :  { %v860_v36 = vmul.f32 0.03125, %v858_v5  ;;  %v855_v37 = vpop.xlane.xlu0 %854  ;;  %v1018_v5 = vld [vmem:[%s3702_s17 + $0x78] sm:$0xff] }
 0xa50   :  { %v859_v39 = vmul.f32 0.03125, %v855_v37  ;;  %v2124_v37 = vld [vmem:[%s3701_s16] ss:$0 sm:$0xff] }
 0xa51   :  { %v862_v11 = vsub.f32 %v3321_v33, %v860_v36  ;;  %v2666_v36 = vpack.c.bf16 %v1018_v5, %v1017_v35  ;;  %v2133_v35 = vld [vmem:[%s3693_s8 + $0x1] ss:$0 sm:$0xff] }
 0xa52   :  { %v861_v7 = vsub.f32 %v3323_v34, %v859_v39 }
 0xa53   :  { %v864_v42 = vmul.f32 %v862_v11, %v862_v11  ;;  %2667 = vmatprep.subr.bf16.mxu1 %v2666_v36 }
 0xa54   :  { %v863_v40 = vmul.f32 %v861_v7, %v861_v7  ;;  %2669 = vmatpush3.bf16.msra.mxu1 %v2666_v36 }
 0xa55   :  { %v868_v43 = vsel %vm191_vm3, %v864_v42, 0.0  ;;  %2686 = vmatprep.subr.bf16.mxu1 %v2900_v3 }
 0xa56   :  { %v865_v41 = vsel %vm187_vm2, %v863_v40, 0.0 }
 0xa57   :  { %866 = vadd.xlane.f32.xlu0 %v865_v41 }
 0xa5b   :  { %869 = vadd.xlane.f32.xlu0 %v868_v43 }
 0xae4   :  { %v867_v51 = vpop.xlane.xlu0 %866 }
 0xae5   :  { %v871_v52 = vmul.f32 0.03125, %v867_v51 }
 0xae7   :  { %v873_v53 = vadd.f32 1e-05, %v871_v52 }
 0xae8   :  { %v870_v54 = vpop.xlane.xlu0 %869 }
 0xae9   :  { %2826 = vrsqrt.f32 %v873_v53  ;;  %v872_v55 = vmul.f32 0.03125, %v870_v54  ;;  %v2129_v54 = vld [vmem:[%s3703_s18] ss:$0 sm:$0xff] }
 0xaeb   :  { %v874_v56 = vadd.f32 1e-05, %v872_v55 }
 0xaed   :  { %2828 = vrsqrt.f32 %v874_v56 }
 0xaf3   :  { %v2827_v57 = vpop.eup %2826 }
 0xaf4   :  { %v877_v59 = vmul.f32 %v2827_v57, %v861_v7 }
 0xaf6   :  { %v885_v61 = vmul.f32 %v2122_v58, %v877_v59 }
 0xaf7   :  { %v2829_v63 = vpop.eup %2828 }
 0xaf8   :  { %v878_v0 = vmul.f32 %v2829_v63, %v862_v11  ;;  %v893_v1 = vadd.f32 %v2123_v60, %v885_v61 }
 0xafa   :  { %v886_v62 = vmul.f32 %v2122_v58, %v878_v0  ;;  %2397 = vmatprep.mubr.msk.f32.mxu0 %vm187_vm2, %v893_v1 }
 0xafc   :  { %v894_v2 = vadd.f32 %v2123_v60, %v886_v62 }
 0xafe   :  { %2398 = vmatmul.mubr.msk.f32.vlgmr.msra.gmra.mrb[4].mxu0 %vm187_vm2, %v894_v2 }
 0xaff   :  { %2673 = vmatpush3.bf16.msra.mxu0 %v2670_v16 }
 0xb00   :  { %2675 = vmatprep.subr.bf16.mxu0 %v2674_v19 }
 0xb03   :  { %2677 = vmatpush3.bf16.msra.mxu0 %v2674_v19 }
 0xb04   :  { %2678 = vmatprep.subr.bf16.mxu0 %v2900_v3 }
 0xbd1   :  { %v2399_v39 = vpop.f32.mrb[4].mxu0 }
 0xbd2   :  { %v984_v11 = vadd.f32 %v2399_v39, %v2124_v37  ;;  %v978_v7 = vpop.f32.mrb[5].mxu0 }
 0xbd3   :  { %v979_v40 = vadd.f32 %v2124_v37, %v978_v7 }
 0xbd4   :  { %v2128_v41 = vmul.f32 -1.702, %v984_v11 }
 0xbd5   :  { %v2127_v42 = vmul.f32 -1.702, %v979_v40 }
 0xbd6   :  { %v993_v43 = vmul.f32 1.442695, %v2128_v41 }
 0xbd7   :  { %v991_v45 = vmul.f32 1.442695, %v2127_v42 }
 0xbd8   :  { %2830 = vpow2.f32 %v993_v43 }
 0xbd9   :  { %2832 = vpow2.f32 %v991_v45 }
 0xbe2   :  { %v2831_v46 = vpop.eup %2830 }
 0xbe3   :  { %v2833_v47 = vpop.eup %2832  ;;  %v996_v48 = vadd.f32 1.0, %v2831_v46 }
 0xbe4   :  { %v995_v49 = vadd.f32 1.0, %v2833_v47 }
 0xbe5   :  { %2834 = vrcp.f32 %v996_v48 }
 0xbe6   :  { %2836 = vrcp.f32 %v995_v49 }
 0xbef   :  { %v2835_v50 = vpop.eup %2834 }
 0xbf0   :  { %v2837_v51 = vpop.eup %2836  ;;  %v1002_v53 = vmul.f32 %v2835_v50, %v984_v11  ;;  %v2139_v11 = vld [vmem:[%s3695_s10 + $0x1] ss:$0 sm:$0xff] }
 0xbf1   :  { %v1001_v52 = vmul.f32 %v2837_v51, %v979_v40 }
 0xbf3   :  { %2432 = vmatprep.mubr.f32.mxu1 %v1001_v52 }
 0xbf4   :  { %2433 = vmatmul.mubr.f32.vlgmr.msra.gmra.mrb[22].mxu1 %v1002_v53 }
 0xbf5   :  { %2481 = vmatprep.mubr.msk.f32.mxu1 %vm2905_vm6, %v2906_v8 }
 0xcc7   :  { %v2434_v55 = vpop.f32.mrb[22].mxu1 }
 0xcc8   :  { %v1098_v56 = vadd.f32 %v2434_v55, %v2129_v54  ;;  %v1092_v57 = vpop.f32.mrb[23].mxu1 }
 0xcc9   :  { %v1093_v58 = vadd.f32 %v2129_v54, %v1092_v57 }
 0xcca   :  { %v3411_v59 = vadd.f32 %v1098_v56, %v3321_v33 }
 0xccb   :  { %v3414_v60 = vadd.f32 %v1093_v58, %v3323_v34 }
 0xccc   :  { %v1110_v61 = vsel %vm191_vm3, %v3411_v59, 0.0 }
 0xccd   :  { %1111 = vadd.xlane.f32.xlu1 %v1110_v61  ;;  %v1107_v63 = vsel %vm187_vm2, %v3414_v60, 0.0 }
 0xcce   :  { %1108 = vadd.xlane.f32.xlu0 %v1107_v63 }
 0xd5a   :  { %v1112_v0 = vpop.xlane.xlu1 %1111 }
 0xd5b   :  { %v1114_v1 = vmul.f32 0.03125, %v1112_v0  ;;  %v1109_v62 = vpop.xlane.xlu0 %1108 }
 0xd5c   :  { %v1113_v2 = vmul.f32 0.03125, %v1109_v62 }
 0xd5d   :  { %v1116_v4 = vsub.f32 %v3411_v59, %v1114_v1 }
 0xd5e   :  { %v1115_v33 = vsub.f32 %v3414_v60, %v1113_v2 }
 0xd5f   :  { %v1118_v9 = vmul.f32 %v1116_v4, %v1116_v4 }
 0xd60   :  { %v1117_v10 = vmul.f32 %v1115_v33, %v1115_v33 }
 0xd61   :  { %v1122_v34 = vsel %vm191_vm3, %v1118_v9, 0.0 }
 0xd62   :  { %1123 = vadd.xlane.f32.xlu1 %v1122_v34  ;;  %v1119_v12 = vsel %vm187_vm2, %v1117_v10, 0.0 }
 0xd63   :  { %1120 = vadd.xlane.f32.xlu0 %v1119_v12 }
 0xdef   :  { %v1124_v20 = vpop.xlane.xlu1 %1123 }
 0xdf0   :  { %v1126_v22 = vmul.f32 0.03125, %v1124_v20  ;;  %v1121_v23 = vpop.xlane.xlu0 %1120 }
 0xdf1   :  { %v1125_v24 = vmul.f32 0.03125, %v1121_v23 }
 0xdf2   :  { %v1128_v25 = vadd.f32 1e-05, %v1126_v22 }
 0xdf3   :  { %v1127_v27 = vadd.f32 1e-05, %v1125_v24 }
 0xdf4   :  { %2838 = vrsqrt.f32 %v1128_v25 }
 0xdf5   :  { %2840 = vrsqrt.f32 %v1127_v27 }
 0xdfe   :  { %v2839_v28 = vpop.eup %2838 }
 0xdff   :  { %v2841_v30 = vpop.eup %2840  ;;  %v1132_v31 = vmul.f32 %v2839_v28, %v1116_v4 }
 0xe00   :  { %v1131_v6 = vmul.f32 %v2841_v30, %v1115_v33 }
 0xe01   :  { %v1140_v5 = vmul.f32 %v2132_v29, %v1132_v31 }
 0xe02   :  { %v1139_v36 = vmul.f32 %v2132_v29, %v1131_v6 }
 0xe03   :  { %v1148_v39 = vadd.f32 %v2133_v35, %v1140_v5 }
 0xe04   :  { %v1147_v37 = vadd.f32 %v2133_v35, %v1139_v36 }
 0xe06   :  { %2443 = vmatprep.mubr.msk.f32.mxu0 %vm187_vm2, %v1147_v37 }
 0xe07   :  { %2444 = vmatmul.mubr.msk.f32.vlgmr.msra.gmra.mrb[6].mxu0 %vm187_vm2, %v1148_v39 }
 0xe08   :  { %2456 = vmatprep.mubr.msk.f32.mxu0 %vm2905_vm6, %v2906_v8 }
 0xeda   :  { %v2445_v7 = vpop.f32.mrb[6].mxu0 }
 0xedb   :  { %v1240_v40 = vadd.f32 %v2445_v7, %v2139_v11  ;;  %v1234_v41 = vpop.f32.mrb[7].mxu0 }
 0xedc   :  { %v1235_v42 = vadd.f32 %v2139_v11, %v1234_v41 }
 0xedd   :  { %v1246_v46 = vrot.slane %v1240_v40, 6  ;;  %v1255_v49 = vrot.slane %v1240_v40, 4  ;;  %v1264_v51 = vrot.slane %v1240_v40, 2 }
 0xede   :  { %v1254_v43 = vrot.slane %v1235_v42, 4  ;;  %v1245_v45 = vrot.slane %v1235_v42, 6  ;;  %v1263_v47 = vrot.slane %v1235_v42, 2 }
 0xee0   :  { %1257 = vrot.lane.b32.xlu1 %v1254_v43, %s2901_s6  ;;  %1248 = vrot.lane.b32.xlu0 %v1245_v45, %s2902_s25  ;;  %v1247_v48 = vsel %vm183_vm1, %v1245_v45, %v1246_v46  ;;  %v1256_v50 = vsel %vm384_vm4, %v1254_v43, %v1255_v49  ;;  %v1265_v52 = vsel %vm394_vm5, %v1263_v47, %v1264_v51 }
 0xee4   :  { %1266 = vrot.lane.b32.xlu0 %v1263_v47, %s2903_s26  ;;  %1250 = vrot.lane.b32.xlu1 %v1247_v48, %s2902_s25 }
 0xee8   :  { %1259 = vrot.lane.b32.xlu1 %v1256_v50, %s2901_s6 }
 0xeec   :  { %1268 = vrot.lane.b32.xlu1 %v1265_v52, %s2903_s26 }
 0xf52   :  { %v1258_v53 = vpop.permute.xlu1 %1257  ;;  %v1249_v54 = vpop.permute.xlu0 %1248 }
 0xf53   :  { %v1271_v55 = vsel %vm183_vm1, %v1240_v40, %v1249_v54 }
 0xf54   :  { %v3460_v56 = vpack.i.bf16 %v1271_v55, %v1235_v42 }
 0xf56   :  { %2779 = vrot.lane.b32.xlu0 %v3460_v56, %s2904_s2  ;;  %v1251_v57 = vpop.permute.xlu1 %1250  ;;  %v1267_v58 = vpop.permute.xlu0 %1266 }
 0xf57   :  { %v1272_v63 = vsel %vm384_vm4, %v1251_v57, %v1258_v53 }
 0xf5a   :  { %v1260_v61 = vpop.permute.xlu1 %1259 }
 0xf5b   :  { %v1273_v0 = vsel %vm394_vm5, %v1260_v61, %v1267_v58 }
 0xf5c   :  { %v3466_v1 = vpack.i.bf16 %v1273_v0, %v1272_v63 }
 0xf5e   :  { %2784 = vrot.lane.b32.xlu1 %v3466_v1, %s2904_s2  ;;  %v3470_v62 = vpop.permute.xlu1 %1268 }
 0xf5f   :  { %1285 = vrot.lane.b32.xlu0 %v3470_v62, %s2904_s2 }
 0xfc8   :  { %v2780_v2 = vpop.permute.xlu0 %2779 }
 0xfc9   :  { %v2782_v4 = vunpack.i.h.bf16 %v2780_v2  ;;  %v2781_v33 = vunpack.i.l.bf16 %v2780_v2 }
 0xfcb   :  { %v2679_v9 = vpack.c.bf16 %v2782_v4, %v2781_v33 }
 0xfcd   :  { %2681 = vmatpush3.bf16.xpose.msk.msra.mxu0 %vm3198_vm8, %v2679_v9 }
 0xfce   :  { %2682 = vmatprep.subr.bf16.mxu0 %v2900_v3 }
 0xfd0   :  { %v2785_v10 = vpop.permute.xlu1 %2784 }
 0xfd1   :  { %v2787_v34 = vunpack.i.h.bf16 %v2785_v10  ;;  %v2786_v12 = vunpack.i.l.bf16 %v2785_v10  ;;  %v1286_v15 = vpop.permute.xlu0 %1285 }
 0xfd3   :  { %v2683_v14 = vpack.c.bf16 %v2787_v34, %v2786_v12 }
 0xfd5   :  { %2685 = vmatpush3.bf16.xpose.msk.msra.mxu0 %vm3198_vm8, %v2683_v14 }
 0xfd6   :  { %2454 = vmatprep.subr.mxu0 %v2906_v8 }
 0xfdd   :  { %2455 = vmatpush3.xpose.msk.msra.mxu0 %vm419_vm7, %v1286_v15 }
 0xfe0   :  { %2457 = vmatmul.mubr.msk.f32.vlgmr.msra.gmra.mrb[8].mxu0 %vm419_vm7, %v1235_v42 }
 0xfe1   :  { %2459 = vmatprep.mubr.msk.f32.mxu0 %vm2905_vm6, %v2906_v8 }
 0xfe4   :  { %2460 = vmatmul.mubr.msk.f32.gmra.mrb[10].mxu0 %vm419_vm7, %v1271_v55 }
 0xfe5   :  { %2462 = vmatprep.mubr.msk.f32.mxu0 %vm2905_vm6, %v2906_v8 }
 0xfe8   :  { %2463 = vmatmul.mubr.msk.f32.gmra.mrb[12].mxu0 %vm419_vm7, %v1272_v63 }
 0xfe9   :  { %2465 = vmatprep.mubr.msk.f32.mxu0 %vm2905_vm6, %v2906_v8 }
 0xfec   :  { %2466 = vmatmul.mubr.msk.f32.gmra.mrb[14].mxu0 %vm419_vm7, %v1273_v0 }
 0xfed   :  { %2468 = vmatprep.mubr.msk.f32.mxu0 %vm2905_vm6, %v2906_v8 }
 0xff0   :  { %2469 = vmatmul.mubr.msk.f32.gmra.mrb[16].mxu0 %vm419_vm7, %v3470_v62 }
0x10b3   :  { %v1373_v13 = vpop.f32.mrb[8].mxu0 }
0x10b4   :  { %v1397_v16 = vmul.f32 0.35355338, %v1373_v13  ;;  %v2458_v17 = vpop.f32.mrb[9].mxu0 }
0x10b6   :  { %v1402_v18 = vadd.f32 %v1397_v16, %v3229_v21 }
0x10b7   :  { %v1378_v19 = vpop.f32.mrb[10].mxu0 }
0x10b8   :  { %v1398_v20 = vmul.f32 0.35355338, %v1378_v19  ;;  %v2461_v22 = vpop.f32.mrb[11].mxu0  ;;  %v1407_v23 = vsel %vm540_vm9, %v1402_v18, -inf }
0x10b9   :  { %1408 = vmax.xlane.f32.xlu1 %v1407_v23 }
0x10ba   :  { %v1403_v24 = vadd.f32 %v1398_v20, %v3235_v26 }
0x10bb   :  { %v1383_v25 = vpop.f32.mrb[12].mxu0 }
0x10bc   :  { %v1399_v27 = vmul.f32 0.35355338, %v1383_v25  ;;  %v2464_v28 = vpop.f32.mrb[13].mxu0  ;;  %v1410_v29 = vsel %vm540_vm9, %v1403_v24, -inf }
0x10bd   :  { %1411 = vmax.xlane.f32.xlu0 %v1410_v29 }
0x10be   :  { %v1404_v30 = vadd.f32 %v1399_v27, %v3242_v32 }
0x10bf   :  { %v1388_v31 = vpop.f32.mrb[14].mxu0 }
0x10c0   :  { %v1400_v6 = vmul.f32 0.35355338, %v1388_v31  ;;  %v2467_v35 = vpop.f32.mrb[15].mxu0  ;;  %v1413_v21 = vsel %vm540_vm9, %v1404_v30, -inf  ;;  %v2157_v31 = vld [vmem:[%s3696_s11 + $0x20] sm:$0xff] }
0x10c1   :  { %1414 = vmax.xlane.f32.xlu0 %v1413_v21 }
0x10c2   :  { %v1405_v5 = vadd.f32 %v1400_v6, %v3249_v38  ;;  %v2158_v6 = vld [vmem:[%s3696_s11 + $0x28] sm:$0xff] }
0x10c3   :  { %v1393_v36 = vpop.f32.mrb[16].mxu0  ;;  %v2692_v35 = vpack.c.bf16 %v2158_v6, %v2157_v31 }
0x10c4   :  { %v1401_v37 = vmul.f32 0.35355338, %v1393_v36  ;;  %v2470_v39 = vpop.f32.mrb[17].mxu0  ;;  %v1416_v26 = vsel %vm540_vm9, %v1405_v5, -inf }
0x10c5   :  { %1417 = vmax.xlane.f32.xlu0 %v1416_v26  ;;  %2693 = vmatprep.subr.bf16.mxu0 %v2692_v35  ;;  %v2160_v39 = vld [vmem:[%s3696_s11 + $0x38] sm:$0xff] }
0x10c6   :  { %v1406_v11 = vadd.f32 %v1401_v37, %v3256_v44  ;;  %2695 = vmatpush3.bf16.msra.mxu0 %v2692_v35  ;;  %v2159_v37 = vld [vmem:[%s3696_s11 + $0x30] sm:$0xff]  ;;  %s3729_s11 = smov 24  }
0x10c8   :  { %v1419_v7 = vsel %vm540_vm9, %v1406_v11, -inf }
0x10c9   :  { %1420 = vmax.xlane.f32.xlu1 %v1419_v7 }
0x10da   :  { %2789 = vrot.lane.b32.xlu1 %v3460_v56, %s2907_s27 }
0x1146   :  { %v1409_v32 = vpop.xlane.xlu1 %1408 }
0x1147   :  { %v1422_v40 = vsub.f32 %v1402_v18, %v1409_v32 }
0x1149   :  { %v1427_v41 = vmul.f32 1.442695, %v1422_v40 }
0x114a   :  { %v1412_v42 = vpop.xlane.xlu0 %1411 }
0x114b   :  { %2842 = vpow2.f32 %v1427_v41  ;;  %v1423_v38 = vsub.f32 %v1403_v24, %v1412_v42 }
0x114d   :  { %v1429_v43 = vmul.f32 1.442695, %v1423_v38 }
0x114e   :  { %v1415_v45 = vpop.xlane.xlu0 %1414 }
0x114f   :  { %2844 = vpow2.f32 %v1429_v43  ;;  %v1424_v46 = vsub.f32 %v1404_v30, %v1415_v45 }
0x1151   :  { %v1431_v47 = vmul.f32 1.442695, %v1424_v46 }
0x1152   :  { %v1418_v48 = vpop.xlane.xlu0 %1417 }
0x1153   :  { %2846 = vpow2.f32 %v1431_v47  ;;  %v1425_v44 = vsub.f32 %v1405_v5, %v1418_v48 }
0x1155   :  { %v2843_v49 = vpop.eup %2842  ;;  %v1433_v50 = vmul.f32 1.442695, %v1425_v44 }
0x1156   :  { %v1421_v51 = vpop.xlane.xlu1 %1420  ;;  %v1437_v52 = vsel %vm540_vm9, %v2843_v49, 0.0 }
0x1157   :  { %2848 = vpow2.f32 %v1433_v50  ;;  %v1426_v53 = vsub.f32 %v1406_v11, %v1421_v51  ;;  %1438 = vadd.xlane.f32.xlu0 %v1437_v52  ;;  %v2696_v11 = vpack.c.bf16 %v2160_v39, %v2159_v37  ;;  %v2167_v39 = vld [vmem:[%s3698_s13 + $0x1] ss:$0 sm:$0xff] }
0x1159   :  { %v2845_v54 = vpop.eup %2844  ;;  %v1435_v55 = vmul.f32 1.442695, %v1426_v53  ;;  %2697 = vmatprep.subr.bf16.mxu0 %v2696_v11 }
0x115a   :  { %v2790_v56 = vpop.permute.xlu1 %2789  ;;  %v1440_v57 = vsel %vm540_vm9, %v2845_v54, 0.0  ;;  %2699 = vmatpush3.bf16.msra.mxu0 %v2696_v11  ;;  %v2168_v11 = vld [vmem:[%s3699_s14 + $0x1] ss:$0 sm:$0xff] }
0x115b   :  { %2850 = vpow2.f32 %v1435_v55  ;;  %v2792_v58 = vunpack.i.h.bf16 %v2790_v56  ;;  %v2791_v61 = vunpack.i.l.bf16 %v2790_v56  ;;  %1441 = vadd.xlane.f32.xlu1 %v1440_v57 }
0x115d   :  { %v2847_v63 = vpop.eup %2846  ;;  %v2687_v0 = vpack.c.bf16 %v2792_v58, %v2791_v61 }
0x115e   :  { %v1443_v2 = vsel %vm540_vm9, %v2847_v63, 0.0 }
0x115f   :  { %1444 = vadd.xlane.f32.xlu0 %v1443_v2  ;;  %2688 = vmatpush3.bf16.msra.mxu1 %v2687_v0 }
0x1160   :  { %2689 = vmatprep.subr.bf16.mxu1 %v2900_v3 }
0x1161   :  { %v2849_v4 = vpop.eup %2848 }
0x1162   :  { %v1446_v33 = vsel %vm540_vm9, %v2849_v4, 0.0 }
0x1163   :  { %1447 = vadd.xlane.f32.xlu1 %v1446_v33 }
0x1165   :  { %v2851_v9 = vpop.eup %2850 }
0x1166   :  { %v1449_v10 = vsel %vm540_vm9, %v2851_v9, 0.0 }
0x1167   :  { %1450 = vadd.xlane.f32.xlu0 %v1449_v10 }
0x1174   :  { %1470 = vrot.lane.b32.xlu1 %v3470_v62, %s2907_s27 }
0x117d   :  { %2794 = vrot.lane.b32.xlu0 %v3466_v1, %s2907_s27 }
0x11e4   :  { %v1439_v34 = vpop.xlane.xlu0 %1438 }
0x11e5   :  { %2852 = vrcp.f32 %v1439_v34 }
0x11e8   :  { %v1442_v14 = vpop.xlane.xlu1 %1441 }
0x11e9   :  { %2854 = vrcp.f32 %v1442_v14 }
0x11ec   :  { %v1445_v12 = vpop.xlane.xlu0 %1444 }
0x11ed   :  { %2856 = vrcp.f32 %v1445_v12 }
0x11ef   :  { %v2853_v20 = vpop.eup %2852 }
0x11f0   :  { %v1448_v18 = vpop.xlane.xlu1 %1447  ;;  %v1457_v62 = vmul.f32 %v2853_v20, %v2843_v49 }
0x11f1   :  { %2858 = vrcp.f32 %v1448_v18 }
0x11f3   :  { %v2855_v1 = vpop.eup %2854 }
0x11f4   :  { %v1451_v15 = vpop.xlane.xlu0 %1450  ;;  %v1471_v22 = vpop.permute.xlu1 %1470  ;;  %v1458_v23 = vmul.f32 %v2855_v1, %v2845_v54 }
0x11f5   :  { %2860 = vrcp.f32 %v1451_v15 }
0x11f7   :  { %v2857_v24 = vpop.eup %2856 }
0x11f8   :  { %v2795_v13 = vpop.permute.xlu0 %2794  ;;  %v1459_v25 = vmul.f32 %v2857_v24, %v2847_v63  ;;  %v2169_v24 = vld [vmem:[%s3700_s15 + $0x20] sm:$0xff] }
0x11f9   :  { %v2797_v16 = vunpack.i.h.bf16 %v2795_v13  ;;  %v2796_v17 = vunpack.i.l.bf16 %v2795_v13 }
0x11fb   :  { %v2690_v19 = vpack.c.bf16 %v2797_v16, %v2796_v17  ;;  %v2859_v27 = vpop.eup %2858 }
0x11fc   :  { %v1460_v28 = vmul.f32 %v2859_v27, %v2849_v4 }
0x11fd   :  { %2691 = vmatpush3.bf16.msra.mxu1 %v2690_v19 }
0x11fe   :  { %2479 = vmatprep.subr.mxu1 %v2906_v8 }
0x11ff   :  { %v2861_v29 = vpop.eup %2860 }
0x1200   :  { %v1461_v30 = vmul.f32 %v2861_v29, %v2851_v9  ;;  %v2164_v9 = vld [vmem:[%s3697_s12 + $0x1] ss:$0 sm:$0xff]  ;;  %v2172_v29 = vld [vmem:[%s3700_s15 + $0x38] sm:$0xff] }
0x1201   :  { %2480 = vmatpush3.msra.mxu1 %v1471_v22 }
0x1202   :  { %2482 = vmatmul.mubr.msk.f32.vlgmr.msra.gmra.mrb[24].mxu1 %vm540_vm9, %v1457_v62 }
0x1203   :  { %2484 = vmatprep.mubr.msk.f32.mxu1 %vm2905_vm6, %v2906_v8 }
0x1206   :  { %2485 = vmatmul.mubr.msk.f32.gmra.mrb[26].mxu1 %vm540_vm9, %v1458_v23 }
0x1207   :  { %2487 = vmatprep.mubr.msk.f32.mxu1 %vm2905_vm6, %v2906_v8 }
0x120a   :  { %2488 = vmatmul.mubr.msk.f32.gmra.mrb[28].mxu1 %vm540_vm9, %v1459_v25  ;;  %v2170_v25 = vld [vmem:[%s3700_s15 + $0x28] sm:$0xff] }
0x120b   :  { %2490 = vmatprep.mubr.msk.f32.mxu1 %vm2905_vm6, %v2906_v8  ;;  %v2700_v27 = vpack.c.bf16 %v2170_v25, %v2169_v24  ;;  %v2196_v25 = vld [vmem:[%s3703_s18 + $0x1] ss:$0 sm:$0xff] }
0x120d   :  { %2701 = vmatprep.subr.bf16.mxu0 %v2700_v27 }
0x120e   :  { %2491 = vmatmul.mubr.msk.f32.gmra.mrb[30].mxu1 %vm540_vm9, %v1460_v28  ;;  %v2171_v28 = vld [vmem:[%s3700_s15 + $0x30] sm:$0xff] }
0x120f   :  { %2493 = vmatprep.mubr.msk.f32.mxu1 %vm2905_vm6, %v2906_v8 }
0x1212   :  { %2494 = vmatmul.mubr.msk.f32.gmra.mrb[32].mxu1 %vm540_vm9, %v1461_v30  ;;  %v2704_v30 = vpack.c.bf16 %v2172_v29, %v2171_v28 }
0x12d5   :  { %v1558_v21 = vpop.f32.mrb[24].mxu1 }
0x12d6   :  { %v2483_v5 = vpop.f32.mrb[25].mxu1 }
0x12d9   :  { %v1563_v36 = vpop.f32.mrb[26].mxu1 }
0x12da   :  { %v2486_v26 = vpop.f32.mrb[27].mxu1  ;;  %v1584_v32 = vrot.slane %v1563_v36, 2 }
0x12dd   :  { %v1568_v7 = vpop.f32.mrb[28].mxu1 }
0x12de   :  { %v1585_v40 = vrot.slane %v1568_v7, 2  ;;  %v2489_v41 = vpop.f32.mrb[29].mxu1  ;;  %v1594_v43 = vrot.slane %v1568_v7, 4 }
0x12e0   :  { %1589 = vrot.lane.b32.xlu1 %v1585_v40, %s2908_s5  ;;  %v1586_v42 = vsel %vm394_vm5, %v1584_v32, %v1585_v40 }
0x12e1   :  { %v1573_v38 = vpop.f32.mrb[30].mxu1 }
0x12e2   :  { %v1595_v45 = vrot.slane %v1573_v38, 4  ;;  %v2492_v46 = vpop.f32.mrb[31].mxu1  ;;  %v1604_v44 = vrot.slane %v1573_v38, 6 }
0x12e4   :  { %1587 = vrot.lane.b32.xlu1 %v1586_v42, %s2908_s5  ;;  %v1596_v47 = vsel %vm384_vm4, %v1594_v43, %v1595_v45  ;;  %v2179_v43 = vld [vmem:[%s3702_s17 + $0x80] sm:$0xff] }
0x12e5   :  { %1597 = vrot.lane.b32.xlu0 %v1596_v47, %s2909_s24  ;;  %v1578_v48 = vpop.f32.mrb[32].mxu1  ;;  %v2181_v47 = vld [vmem:[%s3702_s17 + $0x90] sm:$0xff] }
0x12e6   :  { %v1605_v49 = vrot.slane %v1578_v48, 6  ;;  %v2495_v50 = vpop.f32.mrb[33].mxu1  ;;  %v2182_v48 = vld [vmem:[%s3702_s17 + $0x98] sm:$0xff] }
0x12e8   :  { %1599 = vrot.lane.b32.xlu1 %v1595_v45, %s2909_s24  ;;  %v1606_v51 = vsel %vm183_vm1, %v1604_v44, %v1605_v49  ;;  %v2180_v45 = vld [vmem:[%s3702_s17 + $0x88] sm:$0xff]  ;;  %v2183_v44 = vld [vmem:[%s3702_s17 + $0xa0] sm:$0xff] }
0x12e9   :  { %1607 = vrot.lane.b32.xlu0 %v1606_v51, %s3729_s11  ;;  %v2708_v46 = vpack.c.bf16 %v2180_v45, %v2179_v43  ;;  %v2185_v51 = vld [vmem:[%s3702_s17 + $0xb0] sm:$0xff]  ;;  %v2198_v43 = vld [vmem:[%s3705_s20] ss:$0 sm:$0xff] }
0x12eb   :  { %2709 = vmatprep.subr.bf16.mxu1 %v2708_v46 }
0x12ec   :  { %1609 = vrot.lane.b32.xlu1 %v1605_v49, %s3729_s11  ;;  %2711 = vmatpush3.bf16.msra.mxu1 %v2708_v46  ;;  %v2184_v49 = vld [vmem:[%s3702_s17 + $0xa8] sm:$0xff] }
0x12ed   :  { %v2716_v50 = vpack.c.bf16 %v2184_v49, %v2183_v44 }
0x1352   :  { %v1590_v52 = vpop.permute.xlu1 %1589 }
0x1353   :  { %v1614_v63 = vsel %vm419_vm7, %v1563_v36, %v1590_v52  ;;  %v2186_v52 = vld [vmem:[%s3702_s17 + $0xb8] sm:$0xff] }
0x1356   :  { %v1588_v53 = vpop.permute.xlu1 %1587 }
0x1357   :  { %v1598_v54 = vpop.permute.xlu0 %1597  ;;  %v1613_v55 = vsel %vm419_vm7, %v1558_v21, %v1588_v53  ;;  %v2720_v53 = vpack.c.bf16 %v2186_v52, %v2185_v51 }
0x1358   :  { %v1615_v57 = vsel %vm749_vm10, %v1613_v55, %v1598_v54  ;;  %v2187_v54 = vld [vmem:[%s3702_s17 + $0xc0] sm:$0xff]  ;;  %v2188_v55 = vld [vmem:[%s3702_s17 + $0xc8] sm:$0xff] }
0x135a   :  { %v1600_v56 = vpop.permute.xlu1 %1599 }
0x135b   :  { %v1608_v58 = vpop.permute.xlu0 %1607  ;;  %v1616_v0 = vsel %vm749_vm10, %v1614_v63, %v1600_v56  ;;  %v2724_v56 = vpack.c.bf16 %v2188_v55, %v2187_v54  ;;  %v2191_v63 = vld [vmem:[%s3702_s17 + $0xe0] sm:$0xff] }
0x135c   :  { %v1617_v61 = vsel %vm752_vm11, %v1615_v57, %v1608_v58  ;;  %v2189_v57 = vld [vmem:[%s3702_s17 + $0xd0] sm:$0xff]  ;;  %v2190_v58 = vld [vmem:[%s3702_s17 + $0xd8] sm:$0xff] }
0x135d   :  { %2504 = vmatprep.mubr.msk.f32.mxu0 %vm187_vm2, %v1617_v61  ;;  %v2728_v61 = vpack.c.bf16 %v2190_v58, %v2189_v57 }
0x135e   :  { %v1610_v2 = vpop.permute.xlu1 %1609 }
0x135f   :  { %v1618_v4 = vsel %vm752_vm11, %v1616_v0, %v1610_v2  ;;  %v2192_v0 = vld [vmem:[%s3702_s17 + $0xe8] sm:$0xff] }
0x1360   :  { %2505 = vmatmul.mubr.msk.f32.vlgmr.msra.gmra.mrb[18].mxu0 %vm187_vm2, %v1618_v4  ;;  %v2732_v2 = vpack.c.bf16 %v2192_v0, %v2191_v63  ;;  %v2193_v4 = vld [vmem:[%s3702_s17 + $0xf0] sm:$0xff] }
0x1361   :  { %2703 = vmatpush3.bf16.msra.mxu0 %v2700_v27 }
0x1362   :  { %2705 = vmatprep.subr.bf16.mxu0 %v2704_v30 }
0x1365   :  { %2707 = vmatpush3.bf16.msra.mxu0 %v2704_v30 }
0x1366   :  { %2740 = vmatprep.subr.bf16.mxu0 %v2900_v3 }
0x1433   :  { %v2506_v33 = vpop.f32.mrb[18].mxu0 }
0x1434   :  { %v1706_v10 = vadd.f32 %v2506_v33, %v3411_v59  ;;  %v1696_v34 = vpop.f32.mrb[19].mxu0  ;;  %v2194_v33 = vld [vmem:[%s3702_s17 + $0xf8] sm:$0xff] }
0x1435   :  { %v1705_v12 = vadd.f32 %v1696_v34, %v3414_v60 }
0x1436   :  { %v1716_v14 = vadd.f32 %v2164_v9, %v1706_v10  ;;  %v2174_v10 = vld [vmem:[%s3701_s16 + $0x1] ss:$0 sm:$0xff] }
0x1437   :  { %v3565_v15 = vadd.f32 %v2164_v9, %v1705_v12  ;;  %v2736_v9 = vpack.c.bf16 %v2194_v33, %v2193_v4 }
0x1438   :  { %v1724_v13 = vsel %vm191_vm3, %v1716_v14, 0.0 }
0x1439   :  { %1725 = vadd.xlane.f32.xlu1 %v1724_v13  ;;  %v1721_v16 = vsel %vm187_vm2, %v3565_v15, 0.0 }
0x143a   :  { %1722 = vadd.xlane.f32.xlu0 %v1721_v16 }
0x14c6   :  { %v1726_v17 = vpop.xlane.xlu1 %1725 }
0x14c7   :  { %v1728_v18 = vmul.f32 0.03125, %v1726_v17  ;;  %v1723_v19 = vpop.xlane.xlu0 %1722 }
0x14c8   :  { %v1727_v20 = vmul.f32 0.03125, %v1723_v19 }
0x14c9   :  { %v1730_v62 = vsub.f32 %v1716_v14, %v1728_v18 }
0x14ca   :  { %v1729_v59 = vsub.f32 %v3565_v15, %v1727_v20 }
0x14cb   :  { %v1732_v1 = vmul.f32 %v1730_v62, %v1730_v62 }
0x14cc   :  { %v1731_v22 = vmul.f32 %v1729_v59, %v1729_v59 }
0x14cd   :  { %v1736_v23 = vsel %vm191_vm3, %v1732_v1, 0.0 }
0x14ce   :  { %v1733_v60 = vsel %vm187_vm2, %v1731_v22, 0.0 }
0x14cf   :  { %1734 = vadd.xlane.f32.xlu0 %v1733_v60 }
0x14d3   :  { %1737 = vadd.xlane.f32.xlu0 %v1736_v23 }
0x155c   :  { %v1735_v31 = vpop.xlane.xlu0 %1734 }
0x155d   :  { %v1739_v6 = vmul.f32 0.03125, %v1735_v31 }
0x155f   :  { %v1741_v35 = vadd.f32 1e-05, %v1739_v6 }
0x1560   :  { %v1738_v21 = vpop.xlane.xlu0 %1737 }
0x1561   :  { %2862 = vrsqrt.f32 %v1741_v35  ;;  %v1740_v5 = vmul.f32 0.03125, %v1738_v21 }
0x1563   :  { %v1742_v36 = vadd.f32 1e-05, %v1740_v5 }
0x1565   :  { %2864 = vrsqrt.f32 %v1742_v36 }
0x156b   :  { %v2863_v37 = vpop.eup %2862 }
0x156c   :  { %v1745_v26 = vmul.f32 %v2863_v37, %v1729_v59  ;;  %v2002_v37 = vld [vmem:[%s3706_s21] sm:$0xff] }
0x156e   :  { %v1753_v7 = vmul.f32 %v2167_v39, %v1745_v26 }
0x156f   :  { %v2865_v32 = vpop.eup %2864 }
0x1570   :  { %v1746_v40 = vmul.f32 %v2865_v32, %v1730_v62  ;;  %v1761_v41 = vadd.f32 %v2168_v11, %v1753_v7 }
0x1572   :  { %v1754_v42 = vmul.f32 %v2167_v39, %v1746_v40  ;;  %2515 = vmatprep.mubr.msk.f32.mxu0 %vm187_vm2, %v1761_v41  ;;  %v2003_v39 = vld [vmem:[%s3706_s21 + $0x8] sm:$0xff] }
0x1573   :  { %v2741_v26 = vpack.c.bf16 %v2003_v39, %v2002_v37 }
0x1574   :  { %v1762_v38 = vadd.f32 %v2168_v11, %v1754_v42  ;;  %v2005_v11 = vld [vmem:[%s3706_s21 + $0x18] sm:$0xff] }
0x1576   :  { %2516 = vmatmul.mubr.msk.f32.vlgmr.msra.gmra.mrb[20].mxu0 %vm187_vm2, %v1762_v38  ;;  %v2197_v38 = vld [vmem:[%s3704_s19] ss:$0 sm:$0xff] }
0x1577   :  { %2561 = vmatprep.mubr.msk.f32.mxu0 %vm2905_vm6, %v2906_v8  ;;  %v2712_v8 = vpack.c.bf16 %v2182_v48, %v2181_v47  ;;  %2742 = vmatpush3.bf16.msra.mxu0 %v2741_v26 }
0x1578   :  { %2743 = vmatprep.subr.bf16.mxu0 %v2900_v3 }
0x1579   :  { %2713 = vmatprep.subr.bf16.mxu1 %v2712_v8 }
0x157a   :  { %2715 = vmatpush3.bf16.msra.mxu1 %v2712_v8 }
0x157b   :  { %2717 = vmatprep.subr.bf16.mxu1 %v2716_v50 }
0x157e   :  { %2719 = vmatpush3.bf16.msra.mxu1 %v2716_v50 }
0x157f   :  { %2721 = vmatprep.subr.bf16.mxu1 %v2720_v53 }
0x1582   :  { %2723 = vmatpush3.bf16.msra.mxu1 %v2720_v53 }
0x1583   :  { %2725 = vmatprep.subr.bf16.mxu1 %v2724_v56 }
0x1586   :  { %2727 = vmatpush3.bf16.msra.mxu1 %v2724_v56 }
0x1587   :  { %2729 = vmatprep.subr.bf16.mxu1 %v2728_v61 }
0x158a   :  { %2731 = vmatpush3.bf16.msra.mxu1 %v2728_v61 }
0x158b   :  { %2733 = vmatprep.subr.bf16.mxu1 %v2732_v2 }
0x158e   :  { %2735 = vmatpush3.bf16.msra.mxu1 %v2732_v2 }
0x158f   :  { %2737 = vmatprep.subr.bf16.mxu1 %v2736_v9 }
0x1592   :  { %2739 = vmatpush3.bf16.msra.mxu1 %v2736_v9 }
0x1649   :  { %v2517_v34 = vpop.f32.mrb[20].mxu0 }
0x164a   :  { %v1854_v12 = vadd.f32 %v2517_v34, %v2174_v10  ;;  %v1848_v14 = vpop.f32.mrb[21].mxu0 }
0x164b   :  { %v1849_v13 = vadd.f32 %v2174_v10, %v1848_v14 }
0x164c   :  { %v2178_v16 = vmul.f32 -1.702, %v1854_v12 }
0x164d   :  { %v2177_v17 = vmul.f32 -1.702, %v1849_v13 }
0x164e   :  { %v1863_v18 = vmul.f32 1.442695, %v2178_v16 }
0x164f   :  { %v1861_v19 = vmul.f32 1.442695, %v2177_v17 }
0x1650   :  { %2866 = vpow2.f32 %v1863_v18 }
0x1651   :  { %2868 = vpow2.f32 %v1861_v19 }
0x165a   :  { %v2867_v20 = vpop.eup %2866 }
0x165b   :  { %v2869_v62 = vpop.eup %2868  ;;  %v1866_v59 = vadd.f32 1.0, %v2867_v20 }
0x165c   :  { %v1865_v22 = vadd.f32 1.0, %v2869_v62 }
0x165d   :  { %2870 = vrcp.f32 %v1866_v59 }
0x165e   :  { %2872 = vrcp.f32 %v1865_v22 }
0x1667   :  { %v2871_v60 = vpop.eup %2870 }
0x1668   :  { %v2873_v1 = vpop.eup %2872  ;;  %v1872_v24 = vmul.f32 %v2871_v60, %v1854_v12 }
0x1669   :  { %v1871_v23 = vmul.f32 %v2873_v1, %v1849_v13 }
0x166b   :  { %2550 = vmatprep.mubr.f32.mxu1 %v1871_v23 }
0x166c   :  { %2551 = vmatmul.mubr.f32.vlgmr.msra.gmra.mrb[34].mxu1 %v1872_v24 }
0x173f   :  { %v2552_v27 = vpop.f32.mrb[34].mxu1 }
0x1740   :  { %v1964_v28 = vpop.f32.mrb[35].mxu1 }
0x1741   :  { %v1965_v29 = vadd.f32 %v2196_v25, %v1964_v28 }
0x1743   :  { %v1972_v30 = vadd.f32 %v1965_v29, %v3565_v15  ;;  %v2004_v15 = vld [vmem:[%s3706_s21 + $0x10] sm:$0xff]  ;;  %s2911_s21 = smov [#allocation2]  }
0x1744   :  { %v2744_v7 = vpack.c.bf16 %v2005_v11, %v2004_v15  ;;  %s2087_s7 = sshll.u32 %s2911_s21, 4  ;;  %s2088_s7 = int_to_ptr.vmem [resolvable:$true] %s2087_s7 }
0x1745   :  { %v1975_v31 = vsel %vm191_vm3, %v1972_v30, 0.0  ;;  %s2876_s15 = scalar_lea.vmem %s2088_s7, 32  ;;  %p2881_p1 = scmp.lt.s32.totalorder %s2088_s7, %s2088_s7 }
0x1746   :  { %1976 = vadd.xlane.f32.xlu0 %v1975_v31  ;;  %2745 = vmatpush3.bf16.msra.mxu0 %v2744_v7  ;;  %p2877_p0 = scmp.ne.s32.totalorder %s2088_s7, %s2876_s15  ;;  %p2882_p2 = scmp.lt.s32.totalorder %s2876_s15, %s2876_s15 }
0x1748   :  { %p2883_p3 = por %p2882_p2, %p2881_p1 }
0x174a   :  { %p2884_p4 = pnand %p2883_p3, %p2877_p0 }
0x17d3   :  { %v1977_v6 = vpop.xlane.xlu0 %1976 }
0x17d4   :  { %v1978_v35 = vmul.f32 0.03125, %v1977_v6 }
0x17d6   :  { %v1979_v21 = vsub.f32 %v1972_v30, %v1978_v35 }
0x17d8   :  { %v1980_v5 = vmul.f32 %v1979_v21, %v1979_v21 }
0x17da   :  { %v1981_v36 = vsel %vm191_vm3, %v1980_v5, 0.0 }
0x17db   :  { %1982 = vadd.xlane.f32.xlu1 %v1981_v36 }
0x1868   :  { %v1983_v32 = vpop.xlane.xlu1 %1982 }
0x1869   :  { %v1984_v40 = vmul.f32 0.03125, %v1983_v32 }
0x186b   :  { %v1985_v41 = vadd.f32 1e-05, %v1984_v40 }
0x186d   :  { %2874 = vrsqrt.f32 %v1985_v41 }
0x1877   :  { %v2875_v42 = vpop.eup %2874 }
0x1878   :  { %v1987_v3 = vmul.f32 %v2875_v42, %v1979_v21 }
0x187a   :  { %v1994_v45 = vmul.f32 %v2197_v38, %v1987_v3 }
0x187c   :  { %v2001_v46 = vadd.f32 %v2198_v43, %v1994_v45 }
0x187e   :  { %2562 = vmatmul.mubr.msk.f32.vlgmr.msra.gmra.mrb[22].mxu0 %vm187_vm2, %v2001_v46 }
0x1951   :  { %v2075_v47 = vpop.f32.mrb[22].mxu0 }
0x1952   :  { %2080 = vst.msk [vmem:[#allocation2] sm:$0x3] %vm2079_vm12, %v2075_v47  ;;  %v2563_v48 = vpop.f32.mrb[23].mxu0 }
0x1953   :  { %2887 = shalt.err (!%p2884_p4)
}
0x1954   :  { %s2888_s8 = scalar_lea.hbm %s3707_s22, 32 }
0x1955   :  { %p2889_p5 = scmp.ne.s32.totalorder %s3707_s22, %s2888_s8  ;;  %p2892_p6 = scmp.lt.u32.totalorder %s2888_s8, %s3707_s22 }
0x1957   :  { %p2894_p7 = pnand %p2892_p6, %p2889_p5 }
0x1959   :  { %2897 = shalt.err (!%p2894_p7)
}
0x195a   :  { %2090 = dma.vmem_to_hbm [thread:$0]  %s2088_s7, 32, %s3707_s22, [#allocation3]  }
0x195b   :  { %2898 = dma.done.wait [#allocation3], 32  }
0x195c   :  { %2899 = vsyncadd [#allocation3], 4294967264 }
0x195d   :  { %2094 = vsyncpa [#allocation3], 1 }

</bundles_post_ra>
